<compile_context>
chip_gen: v7x
topology: tpu7x:2x2x1
jax: 0.10.0
libtpu: 0.0.40
codegen_flags: <defaults>
</compile_context>

<pallas_src>
import functools

import jax
import jax.numpy as jnp
from jax.experimental import pallas as pl
from jax.experimental.pallas import tpu as pltpu


def _round_up(v, m):
    return (v + m - 1) // m * m


def _pad2(a, rows, cols):
    return jnp.pad(a, ((0, rows - a.shape[0]), (0, cols - a.shape[1])))


# ----------------------------------------------------------------------------
# Shared GIN layer math (used by both the Pallas kernel body and the reference)
# ----------------------------------------------------------------------------
def _gin_layer(a_bf, h_bf, w1_bf, b1, w2_bf, b2, *, reorder_first=False):
    """GINConv(eps=0, mlp=Linear->ReLU->Linear) followed by the outer F.relu.

    All matmuls use bf16 operands with f32 MXU accumulation; bias adds / ReLU in f32.
    reorder_first applies A @ (h @ W1) == (A @ h) @ W1 when it saves FLOPs (in > h1).
    """
    if reorder_first:
        t = jnp.dot(h_bf, w1_bf, preferred_element_type=jnp.float32).astype(jnp.bfloat16)
        z = jnp.dot(a_bf, t, preferred_element_type=jnp.float32) + b1
    else:
        s = jnp.dot(a_bf, h_bf, preferred_element_type=jnp.float32).astype(jnp.bfloat16)
        z = jnp.dot(s, w1_bf, preferred_element_type=jnp.float32) + b1
    z = jnp.maximum(z, 0.0).astype(jnp.bfloat16)
    z = jnp.dot(z, w2_bf, preferred_element_type=jnp.float32) + b2
    return jnp.maximum(z, 0.0).astype(jnp.bfloat16)


# ----------------------------------------------------------------------------
# Pallas kernel: one grid step == one graph (3x GIN layer + mean pool + fc).
# ----------------------------------------------------------------------------
def _gin_graph_kernel(
    x_ref, a_ref, m_ref,
    w11_ref, b11_ref, w12_ref, b12_ref,
    w21_ref, b21_ref, w22_ref, b22_ref,
    w31_ref, b31_ref, w32_ref, b32_ref,
    wfc_ref, bfc_ref,
    out_ref,
    *, layer1_reorder,
):
    a = a_ref[0]      # (Np, Np)  bf16 block-diagonal sub-adjacency, +I folded in
    h = x_ref[0]      # (Np, Fin) bf16 node features (padded rows are zero)

    h = _gin_layer(a, h, w11_ref[...], b11_ref[...], w12_ref[...], b12_ref[...],
                   reorder_first=layer1_reorder)
    h = _gin_layer(a, h, w21_ref[...], b21_ref[...], w22_ref[...], b22_ref[...])
    h = _gin_layer(a, h, w31_ref[...], b31_ref[...], w32_ref[...], b32_ref[...])

    # Dropout(0.3): identity in eval mode.
    # global_mean_pool: exact 0/1 mask (bf16) @ h (bf16) with f32 accumulation, then
    # divide by the per-graph node count in f32 (review fix: no bf16-rounded 1/count).
    m = m_ref[0]                                                          # (8, Np) f32; row 0 = mask
    count = jnp.maximum(jnp.sum(m[0:1, :], axis=1, keepdims=True), 1.0)   # (1, 1) f32
    pooled = jnp.dot(m.astype(jnp.bfloat16), h,
                     preferred_element_type=jnp.float32) * (1.0 / count)  # (8, H2); rows 1..7 = 0
    out = (jnp.dot(pooled.astype(jnp.bfloat16), wfc_ref[...],
                   preferred_element_type=jnp.float32) + bfc_ref[...])    # (8, Out)
    out_ref[0] = out  # wrapper reads row 0 only


# ----------------------------------------------------------------------------
# Wrapper: O(E)/O(N) per-graph densification + pallas_call over a graph grid.
# ----------------------------------------------------------------------------
def _forward_impl(x, edge_index, batch, params, num_graphs, max_nodes_per_graph):
    n, in_dim = x.shape
    h1 = params["w11"].shape[1]
    h2 = params["w22"].shape[1]
    out_dim = params["wfc"].shape[1]

    np_ = _round_up(max(int(max_nodes_per_graph), 1), 128)   # per-graph node block (lane dense)
    in_pad = _round_up(in_dim, 128)
    h1_pad = _round_up(h1, 128)
    h2_pad = _round_up(h2, 128)
    out_pad = _round_up(out_dim, 128)
    layer1_reorder = in_pad > h1_pad

    batch = batch.astype(jnp.int32)
    src = edge_index[0].astype(jnp.int32)
    dst = edge_index[1].astype(jnp.int32)

    # Local position of every node inside its graph (robust to unsorted `batch`).
    gids = jnp.arange(num_graphs, dtype=jnp.int32)
    node_onehot = (batch[:, None] == gids[None, :]).astype(jnp.int32)            # (n, G)
    pos = jnp.take_along_axis(jnp.cumsum(node_onehot, axis=0),
                              batch[:, None], axis=1)[:, 0] - 1                  # (n,)

    # Per-graph node features, zero padded to (G, Np, Fin).
    x_rows = jnp.pad(x.astype(jnp.float32), ((0, 0), (0, in_pad - in_dim)))
    xg = (jnp.zeros((num_graphs, np_, in_pad), jnp.float32)
          .at[batch, pos].set(x_rows)).astype(jnp.bfloat16)

    # Block-diagonal per-graph adjacency with the GIN self term folded in: A_g + I.
    # O(E) scatter-add (no one-hot matmul). Assumes edges never cross graphs (PyG batching).
    # bf16 is exact for integer edge multiplicities <= 256.
    ag = jnp.zeros((num_graphs, np_, np_), jnp.float32)
    ag = ag.at[batch[dst], pos[dst], pos[src]].add(1.0)
    ag = ag.at[batch, pos, pos].add(1.0)
    ag = ag.astype(jnp.bfloat16)

    # Valid-node mask: row 0 of an (8, Np) slab per graph (keeps the block (8,128)-tileable).
    mask = (jnp.zeros((num_graphs, 8, np_), jnp.float32)
            .at[batch, jnp.zeros_like(batch), pos].set(1.0))

    def wpad(w, r, c):
        return _pad2(w.astype(jnp.float32), r, c).astype(jnp.bfloat16)

    def bpad(b, c):
        return _pad2(b.astype(jnp.float32), 1, c)   # biases stay f32

    operands = (
        xg, ag, mask,
        wpad(params["w11"], in_pad, h1_pad), bpad(params["b11"], h1_pad),
        wpad(params["w12"], h1_pad, h1_pad), bpad(params["b12"], h1_pad),
        wpad(params["w21"], h1_pad, h2_pad), bpad(params["b21"], h2_pad),
        wpad(params["w22"], h2_pad, h2_pad), bpad(params["b22"], h2_pad),
        wpad(params["w31"], h2_pad, h2_pad), bpad(params["b31"], h2_pad),
        wpad(params["w32"], h2_pad, h2_pad), bpad(params["b32"], h2_pad),
        wpad(params["wfc"], h2_pad, out_pad), bpad(params["bfc"], out_pad),
    )

    def param_spec(r, c):
        return pl.BlockSpec((r, c), lambda g: (0, 0))   # weights/biases stay VMEM-resident

    in_specs = [
        pl.BlockSpec((1, np_, in_pad), lambda g: (g, 0, 0)),   # xg
        pl.BlockSpec((1, np_, np_), lambda g: (g, 0, 0)),      # ag (dominant, streamed per graph)
        pl.BlockSpec((1, 8, np_), lambda g: (g, 0, 0)),        # mask
        param_spec(in_pad, h1_pad), param_spec(1, h1_pad),
        param_spec(h1_pad, h1_pad), param_spec(1, h1_pad),
        param_spec(h1_pad, h2_pad), param_spec(1, h2_pad),
        param_spec(h2_pad, h2_pad), param_spec(1, h2_pad),
        param_spec(h2_pad, h2_pad), param_spec(1, h2_pad),
        param_spec(h2_pad, h2_pad), param_spec(1, h2_pad),
        param_spec(h2_pad, out_pad), param_spec(1, out_pad),
    ]
    out_spec = pl.BlockSpec((1, 8, out_pad), lambda g: (g, 0, 0))

    # VMEM request: double-buffered per-step blocks + f32 activation headroom,
    # clamped to the chip's capacity (v7x has 64 MiB/TC, not 128).
    per_step_in_bytes = (
        np_ * in_pad * 2 + np_ * np_ * 2 + 8 * np_ * 4
        + sum(int(o.size) * o.dtype.itemsize for o in operands[3:])
    )
    per_step_out_bytes = 8 * out_pad * 4
    act_bytes = 3 * np_ * max(in_pad, h1_pad, h2_pad) * 4
    vmem_needed = 2 * (per_step_in_bytes + per_step_out_bytes) + act_bytes
    try:
        vmem_cap = int(pltpu.get_tpu_info().vmem_capacity_bytes)
    except Exception:
        vmem_cap = 64 << 20   # conservative (v7x per-TensorCore)
    vmem_limit = int(min(max(vmem_needed, 16 << 20), vmem_cap - (4 << 20)))

    # Advisory cost estimate (per-graph block FLOPs, not dense-batch FLOPs).
    agg1_f = h1_pad if layer1_reorder else in_pad
    flops_per_graph = (
        2 * np_ * np_ * (agg1_f + h1_pad + h2_pad)
        + 2 * np_ * (in_pad * h1_pad + h1_pad * h1_pad)
        + 2 * np_ * (h1_pad * h2_pad + h2_pad * h2_pad)
        + 2 * np_ * (h2_pad * h2_pad + h2_pad * h2_pad)
        + 2 * 8 * np_ * h2_pad
        + 2 * 8 * h2_pad * out_pad
    )
    in_bytes = sum(int(o.size) * o.dtype.itemsize for o in operands)
    out_bytes = num_graphs * 8 * out_pad * 4
    cost = pl.CostEstimate(flops=num_graphs * flops_per_graph, transcendentals=0,
                           bytes_accessed=in_bytes + out_bytes)

    out_full = pl.pallas_call(
        functools.partial(_gin_graph_kernel, layer1_reorder=layer1_reorder),
        out_shape=jax.ShapeDtypeStruct((num_graphs, 8, out_pad), jnp.float32),
        grid=(num_graphs,),
        in_specs=in_specs,
        out_specs=out_spec,
        compiler_params=pltpu.CompilerParams(
            dimension_semantics=("parallel",),   # v7x megacore: graphs split across 2 TCs
            vmem_limit_bytes=vmem_limit),
        cost_estimate=cost,
    )(*operands)

    return out_full[:, 0, :out_dim]


_forward_jit = jax.jit(_forward_impl,
                       static_argnames=("num_graphs", "max_nodes_per_graph"))


def graph_encoder_gin_forward(x, edge_index, batch, params, num_graphs,
                              max_nodes_per_graph=None):
    if max_nodes_per_graph is None:
        # Host-side sync; pass max_nodes_per_graph explicitly when calling under jit.
        counts = jnp.bincount(batch.astype(jnp.int32), length=int(num_graphs))
        max_nodes_per_graph = int(jnp.max(counts))
    return _forward_jit(x, edge_index, batch, params,
                        num_graphs=int(num_graphs),
                        max_nodes_per_graph=int(max_nodes_per_graph))


# ----------------------------------------------------------------------------
# Deterministic parameter init (kaiming_normal fan_out / relu, zero MLP biases;
# fc bias keeps PyTorch's default uniform init).
# ----------------------------------------------------------------------------
def init_params(key, input_dim, hidden_dim1, hidden_dim2, output_dim):
    keys = jax.random.split(key, 8)

    def kaiming_t(k, in_dim, out_dim):
        # PyTorch weight is (out, in); kaiming fan_out std = sqrt(2/out).
        # Stored transposed (in, out) for x @ W.
        std = (2.0 / out_dim) ** 0.5
        return (jax.random.normal(k, (out_dim, in_dim), jnp.float32) * std).T

    return {
        "w11": kaiming_t(keys[0], input_dim, hidden_dim1),
        "b11": jnp.zeros((1, hidden_dim1), jnp.float32),
        "w12": kaiming_t(keys[1], hidden_dim1, hidden_dim1),
        "b12": jnp.zeros((1, hidden_dim1), jnp.float32),
        "w21": kaiming_t(keys[2], hidden_dim1, hidden_dim2),
        "b21": jnp.zeros((1, hidden_dim2), jnp.float32),
        "w22": kaiming_t(keys[3], hidden_dim2, hidden_dim2),
        "b22": jnp.zeros((1, hidden_dim2), jnp.float32),
        "w31": kaiming_t(keys[4], hidden_dim2, hidden_dim2),
        "b31": jnp.zeros((1, hidden_dim2), jnp.float32),
        "w32": kaiming_t(keys[5], hidden_dim2, hidden_dim2),
        "b32": jnp.zeros((1, hidden_dim2), jnp.float32),
        "wfc": kaiming_t(keys[6], hidden_dim2, output_dim),
        "bfc": jax.random.uniform(
            keys[7], (1, output_dim), jnp.float32,
            -1.0 / hidden_dim2 ** 0.5, 1.0 / hidden_dim2 ** 0.5),
    }


# ----------------------------------------------------------------------------
# Pure-JAX reference on the FULL dense batch adjacency (structurally independent
# of the per-graph block decomposition) with matching bf16/f32 discipline.
# ----------------------------------------------------------------------------
def reference_forward(x, edge_index, batch, params, num_graphs):
    n, in_dim = x.shape
    h1 = params["w11"].shape[1]
    reorder = _round_up(in_dim, 128) > _round_up(h1, 128)

    src = edge_index[0].astype(jnp.int32)
    dst = edge_index[1].astype(jnp.int32)
    a_hat = (jnp.zeros((n, n), jnp.float32).at[dst, src].add(1.0)
             + jnp.eye(n, dtype=jnp.float32)).astype(jnp.bfloat16)

    bf = lambda v: v.astype(jnp.bfloat16)
    h = bf(x)
    h = _gin_layer(a_hat, h, bf(params["w11"]), params["b11"],
                   bf(params["w12"]), params["b12"], reorder_first=reorder)
    h = _gin_layer(a_hat, h, bf(params["w21"]), params["b21"],
                   bf(params["w22"]), params["b22"])
    h = _gin_layer(a_hat, h, bf(params["w31"]), params["b31"],
                   bf(params["w32"]), params["b32"])

    one_hot = (batch[None, :].astype(jnp.int32) ==
               jnp.arange(num_graphs, dtype=jnp.int32)[:, None]).astype(jnp.float32)
    counts = jnp.maximum(one_hot.sum(axis=1, keepdims=True), 1.0)
    pooled = jnp.dot(bf(one_hot), h, preferred_element_type=jnp.float32) / counts
    return (jnp.dot(bf(pooled), bf(params["wfc"]),
                    preferred_element_type=jnp.float32) + params["bfc"])


if __name__ == "__main__":
    key = jax.random.PRNGKey(0)
    k_x, k_e0, k_e1, k_p = jax.random.split(key, 4)

    # Small, module-consistent shapes.
    input_dim, hidden_dim1, hidden_dim2, output_dim = 16, 32, 32, 8
    nodes_per_graph, edges_per_graph, num_graphs = 8, 20, 2
    num_nodes = nodes_per_graph * num_graphs

    x = jax.random.normal(k_x, (num_nodes, input_dim), jnp.float32)
    # Edges stay inside each graph (standard PyG batching invariant).
    e0 = jax.random.randint(k_e0, (2, edges_per_graph), 0, nodes_per_graph, jnp.int32)
    e1 = jax.random.randint(k_e1, (2, edges_per_graph),
                            nodes_per_graph, 2 * nodes_per_graph, jnp.int32)
    edge_index = jnp.concatenate([e0, e1], axis=1)
    batch = jnp.repeat(jnp.arange(num_graphs, dtype=jnp.int32), nodes_per_graph)

    params = init_params(k_p, input_dim, hidden_dim1, hidden_dim2, output_dim)

    out = graph_encoder_gin_forward(x, edge_index, batch, params, num_graphs,
                                    max_nodes_per_graph=nodes_per_graph)
    out = jax.block_until_ready(out)

    ref = reference_forward(x, edge_index, batch, params, num_graphs)
    assert out.shape == (num_graphs, output_dim), out.shape
    # Both paths share bf16 cast points / f32 accumulation; tolerance covers summation-order
    # differences between the per-graph-block and dense-batch contractions.
    assert bool(jnp.allclose(out, ref, atol=1e-2, rtol=1e-2)), (out, ref)

    print("KERNEL_OK")
</pallas_src>

<mosaic_0001>
module attributes {stable_mosaic.version = 11 : i64} {
  func.func private @main(%arg0: i32) attributes {dimension_semantics = [#tpu.dimension_semantics<core_parallel>], iteration_bounds = array<i64: 2>, tpu.core_type = #tpu.core_type<sc_scalar_subcore>, window_params = []} {
    return
  }
}

module attributes {stable_mosaic.version = 11 : i64} {
  func.func private @main(%arg0: i32) attributes {dimension_semantics = [#tpu.dimension_semantics<core_parallel>], iteration_bounds = array<i64: 2>, tpu.core_type = #tpu.core_type<sc_scalar_subcore>, window_params = []} {
    return
  }
}

module attributes {stable_mosaic.version = 11 : i64} {
  func.func @_gin_graph_kernel(%arg0: i32, %arg1: memref<1x128x128xbf16, #tpu.memory_space<vmem>>, %arg2: memref<1x128x128xbf16, #tpu.memory_space<vmem>>, %arg3: memref<1x8x128xf32, #tpu.memory_space<vmem>>, %arg4: memref<128x128xbf16, #tpu.memory_space<vmem>>, %arg5: memref<1x128xf32, #tpu.memory_space<vmem>>, %arg6: memref<128x128xbf16, #tpu.memory_space<vmem>>, %arg7: memref<1x128xf32, #tpu.memory_space<vmem>>, %arg8: memref<128x128xbf16, #tpu.memory_space<vmem>>, %arg9: memref<1x128xf32, #tpu.memory_space<vmem>>, %arg10: memref<128x128xbf16, #tpu.memory_space<vmem>>, %arg11: memref<1x128xf32, #tpu.memory_space<vmem>>, %arg12: memref<128x128xbf16, #tpu.memory_space<vmem>>, %arg13: memref<1x128xf32, #tpu.memory_space<vmem>>, %arg14: memref<128x128xbf16, #tpu.memory_space<vmem>>, %arg15: memref<1x128xf32, #tpu.memory_space<vmem>>, %arg16: memref<128x128xbf16, #tpu.memory_space<vmem>>, %arg17: memref<1x128xf32, #tpu.memory_space<vmem>>, %arg18: memref<1x8x128xf32, #tpu.memory_space<vmem>>) attributes {dimension_semantics = [#tpu.dimension_semantics<parallel>], iteration_bounds = array<i64: 2>, scalar_prefetch = 0 : i64, scratch_operands = 0 : i64, tpu.core_type = #tpu.core_type<tc>, window_params = [{transform_indices = @transform_0, window_bounds = array<i64: 1, 128, 128>}, {transform_indices = @transform_1, window_bounds = array<i64: 1, 128, 128>}, {transform_indices = @transform_2, window_bounds = array<i64: 1, 8, 128>}, {pipeline_mode = #tpu.pipeline_mode<synchronous>, transform_indices = @transform_3, window_bounds = array<i64: 128, 128>}, {pipeline_mode = #tpu.pipeline_mode<synchronous>, transform_indices = @transform_4, window_bounds = array<i64: 1, 128>}, {pipeline_mode = #tpu.pipeline_mode<synchronous>, transform_indices = @transform_5, window_bounds = array<i64: 128, 128>}, {pipeline_mode = #tpu.pipeline_mode<synchronous>, transform_indices = @transform_6, window_bounds = array<i64: 1, 128>}, {pipeline_mode = #tpu.pipeline_mode<synchronous>, transform_indices = @transform_7, window_bounds = array<i64: 128, 128>}, {pipeline_mode = #tpu.pipeline_mode<synchronous>, transform_indices = @transform_8, window_bounds = array<i64: 1, 128>}, {pipeline_mode = #tpu.pipeline_mode<synchronous>, transform_indices = @transform_9, window_bounds = array<i64: 128, 128>}, {pipeline_mode = #tpu.pipeline_mode<synchronous>, transform_indices = @transform_10, window_bounds = array<i64: 1, 128>}, {pipeline_mode = #tpu.pipeline_mode<synchronous>, transform_indices = @transform_11, window_bounds = array<i64: 128, 128>}, {pipeline_mode = #tpu.pipeline_mode<synchronous>, transform_indices = @transform_12, window_bounds = array<i64: 1, 128>}, {pipeline_mode = #tpu.pipeline_mode<synchronous>, transform_indices = @transform_13, window_bounds = array<i64: 128, 128>}, {pipeline_mode = #tpu.pipeline_mode<synchronous>, transform_indices = @transform_14, window_bounds = array<i64: 1, 128>}, {pipeline_mode = #tpu.pipeline_mode<synchronous>, transform_indices = @transform_15, window_bounds = array<i64: 128, 128>}, {pipeline_mode = #tpu.pipeline_mode<synchronous>, transform_indices = @transform_16, window_bounds = array<i64: 1, 128>}, {transform_indices = @transform_17, window_bounds = array<i64: 1, 8, 128>}]} {
    %c0 = arith.constant 0 : index
    %c0_0 = arith.constant 0 : index
    %c0_1 = arith.constant 0 : index
    %0 = vector.load %arg2[%c0, %c0_0, %c0_1] : memref<1x128x128xbf16, #tpu.memory_space<vmem>>, vector<1x128x128xbf16>
    %1 = vector.shape_cast %0 : vector<1x128x128xbf16> to vector<128x128xbf16>
    %c0_2 = arith.constant 0 : index
    %c0_3 = arith.constant 0 : index
    %c0_4 = arith.constant 0 : index
    %2 = vector.load %arg1[%c0_2, %c0_3, %c0_4] : memref<1x128x128xbf16, #tpu.memory_space<vmem>>, vector<1x128x128xbf16>
    %3 = vector.shape_cast %2 : vector<1x128x128xbf16> to vector<128x128xbf16>
    %c0_5 = arith.constant 0 : index
    %c0_6 = arith.constant 0 : index
    %4 = vector.load %arg4[%c0_5, %c0_6] : memref<128x128xbf16, #tpu.memory_space<vmem>>, vector<128x128xbf16>
    %c0_7 = arith.constant 0 : index
    %c0_8 = arith.constant 0 : index
    %5 = vector.load %arg5[%c0_7, %c0_8] : memref<1x128xf32, #tpu.memory_space<vmem>>, vector<1x128xf32>
    %c0_9 = arith.constant 0 : index
    %c0_10 = arith.constant 0 : index
    %6 = vector.load %arg6[%c0_9, %c0_10] : memref<128x128xbf16, #tpu.memory_space<vmem>>, vector<128x128xbf16>
    %c0_11 = arith.constant 0 : index
    %c0_12 = arith.constant 0 : index
    %7 = vector.load %arg7[%c0_11, %c0_12] : memref<1x128xf32, #tpu.memory_space<vmem>>, vector<1x128xf32>
    %cst = arith.constant dense<0.000000e+00> : vector<128x128xf32>
    %8 = tpu.matmul %1, %3, %cst {dimension_numbers = #tpu.dot_dimension_numbers<[1], [0], [0], [1], [0, 0, 1, 1], [], []>} : vector<128x128xbf16>, vector<128x128xbf16>, vector<128x128xf32> -> vector<128x128xf32>
    %9 = arith.truncf %8 : vector<128x128xf32> to vector<128x128xbf16>
    %cst_13 = arith.constant dense<0.000000e+00> : vector<128x128xf32>
    %10 = tpu.matmul %9, %4, %cst_13 {dimension_numbers = #tpu.dot_dimension_numbers<[1], [0], [0], [1], [0, 0, 1, 1], [], []>} : vector<128x128xbf16>, vector<128x128xbf16>, vector<128x128xf32> -> vector<128x128xf32>
    %11 = vector.broadcast %5 : vector<1x128xf32> to vector<128x128xf32>
    %12 = arith.addf %10, %11 : vector<128x128xf32>
    %cst_14 = arith.constant 0.000000e+00 : f32
    %13 = vector.broadcast %cst_14 : f32 to vector<128x128xf32>
    %14 = arith.maximumf %12, %13 : vector<128x128xf32>
    %15 = arith.truncf %14 : vector<128x128xf32> to vector<128x128xbf16>
    %cst_15 = arith.constant dense<0.000000e+00> : vector<128x128xf32>
    %16 = tpu.matmul %15, %6, %cst_15 {dimension_numbers = #tpu.dot_dimension_numbers<[1], [0], [0], [1], [0, 0, 1, 1], [], []>} : vector<128x128xbf16>, vector<128x128xbf16>, vector<128x128xf32> -> vector<128x128xf32>
    %17 = vector.broadcast %7 : vector<1x128xf32> to vector<128x128xf32>
    %18 = arith.addf %16, %17 : vector<128x128xf32>
    %cst_16 = arith.constant 0.000000e+00 : f32
    %19 = vector.broadcast %cst_16 : f32 to vector<128x128xf32>
    %20 = arith.maximumf %18, %19 : vector<128x128xf32>
    %21 = arith.truncf %20 : vector<128x128xf32> to vector<128x128xbf16>
    %c0_17 = arith.constant 0 : index
    %c0_18 = arith.constant 0 : index
    %22 = vector.load %arg8[%c0_17, %c0_18] : memref<128x128xbf16, #tpu.memory_space<vmem>>, vector<128x128xbf16>
    %c0_19 = arith.constant 0 : index
    %c0_20 = arith.constant 0 : index
    %23 = vector.load %arg9[%c0_19, %c0_20] : memref<1x128xf32, #tpu.memory_space<vmem>>, vector<1x128xf32>
    %c0_21 = arith.constant 0 : index
    %c0_22 = arith.constant 0 : index
    %24 = vector.load %arg10[%c0_21, %c0_22] : memref<128x128xbf16, #tpu.memory_space<vmem>>, vector<128x128xbf16>
    %c0_23 = arith.constant 0 : index
    %c0_24 = arith.constant 0 : index
    %25 = vector.load %arg11[%c0_23, %c0_24] : memref<1x128xf32, #tpu.memory_space<vmem>>, vector<1x128xf32>
    %cst_25 = arith.constant dense<0.000000e+00> : vector<128x128xf32>
    %26 = tpu.matmul %1, %21, %cst_25 {dimension_numbers = #tpu.dot_dimension_numbers<[1], [0], [0], [1], [0, 0, 1, 1], [], []>} : vector<128x128xbf16>, vector<128x128xbf16>, vector<128x128xf32> -> vector<128x128xf32>
    %27 = arith.truncf %26 : vector<128x128xf32> to vector<128x128xbf16>
    %cst_26 = arith.constant dense<0.000000e+00> : vector<128x128xf32>
    %28 = tpu.matmul %27, %22, %cst_26 {dimension_numbers = #tpu.dot_dimension_numbers<[1], [0], [0], [1], [0, 0, 1, 1], [], []>} : vector<128x128xbf16>, vector<128x128xbf16>, vector<128x128xf32> -> vector<128x128xf32>
    %29 = vector.broadcast %23 : vector<1x128xf32> to vector<128x128xf32>
    %30 = arith.addf %28, %29 : vector<128x128xf32>
    %cst_27 = arith.constant 0.000000e+00 : f32
    %31 = vector.broadcast %cst_27 : f32 to vector<128x128xf32>
    %32 = arith.maximumf %30, %31 : vector<128x128xf32>
    %33 = arith.truncf %32 : vector<128x128xf32> to vector<128x128xbf16>
    %cst_28 = arith.constant dense<0.000000e+00> : vector<128x128xf32>
    %34 = tpu.matmul %33, %24, %cst_28 {dimension_numbers = #tpu.dot_dimension_numbers<[1], [0], [0], [1], [0, 0, 1, 1], [], []>} : vector<128x128xbf16>, vector<128x128xbf16>, vector<128x128xf32> -> vector<128x128xf32>
    %35 = vector.broadcast %25 : vector<1x128xf32> to vector<128x128xf32>
    %36 = arith.addf %34, %35 : vector<128x128xf32>
    %cst_29 = arith.constant 0.000000e+00 : f32
    %37 = vector.broadcast %cst_29 : f32 to vector<128x128xf32>
    %38 = arith.maximumf %36, %37 : vector<128x128xf32>
    %39 = arith.truncf %38 : vector<128x128xf32> to vector<128x128xbf16>
    %c0_30 = arith.constant 0 : index
    %c0_31 = arith.constant 0 : index
    %40 = vector.load %arg12[%c0_30, %c0_31] : memref<128x128xbf16, #tpu.memory_space<vmem>>, vector<128x128xbf16>
    %c0_32 = arith.constant 0 : index
    %c0_33 = arith.constant 0 : index
    %41 = vector.load %arg13[%c0_32, %c0_33] : memref<1x128xf32, #tpu.memory_space<vmem>>, vector<1x128xf32>
    %c0_34 = arith.constant 0 : index
    %c0_35 = arith.constant 0 : index
    %42 = vector.load %arg14[%c0_34, %c0_35] : memref<128x128xbf16, #tpu.memory_space<vmem>>, vector<128x128xbf16>
    %c0_36 = arith.constant 0 : index
    %c0_37 = arith.constant 0 : index
    %43 = vector.load %arg15[%c0_36, %c0_37] : memref<1x128xf32, #tpu.memory_space<vmem>>, vector<1x128xf32>
    %cst_38 = arith.constant dense<0.000000e+00> : vector<128x128xf32>
    %44 = tpu.matmul %1, %39, %cst_38 {dimension_numbers = #tpu.dot_dimension_numbers<[1], [0], [0], [1], [0, 0, 1, 1], [], []>} : vector<128x128xbf16>, vector<128x128xbf16>, vector<128x128xf32> -> vector<128x128xf32>
    %45 = arith.truncf %44 : vector<128x128xf32> to vector<128x128xbf16>
    %cst_39 = arith.constant dense<0.000000e+00> : vector<128x128xf32>
    %46 = tpu.matmul %45, %40, %cst_39 {dimension_numbers = #tpu.dot_dimension_numbers<[1], [0], [0], [1], [0, 0, 1, 1], [], []>} : vector<128x128xbf16>, vector<128x128xbf16>, vector<128x128xf32> -> vector<128x128xf32>
    %47 = vector.broadcast %41 : vector<1x128xf32> to vector<128x128xf32>
    %48 = arith.addf %46, %47 : vector<128x128xf32>
    %cst_40 = arith.constant 0.000000e+00 : f32
    %49 = vector.broadcast %cst_40 : f32 to vector<128x128xf32>
    %50 = arith.maximumf %48, %49 : vector<128x128xf32>
    %51 = arith.truncf %50 : vector<128x128xf32> to vector<128x128xbf16>
    %cst_41 = arith.constant dense<0.000000e+00> : vector<128x128xf32>
    %52 = tpu.matmul %51, %42, %cst_41 {dimension_numbers = #tpu.dot_dimension_numbers<[1], [0], [0], [1], [0, 0, 1, 1], [], []>} : vector<128x128xbf16>, vector<128x128xbf16>, vector<128x128xf32> -> vector<128x128xf32>
    %53 = vector.broadcast %43 : vector<1x128xf32> to vector<128x128xf32>
    %54 = arith.addf %52, %53 : vector<128x128xf32>
    %cst_42 = arith.constant 0.000000e+00 : f32
    %55 = vector.broadcast %cst_42 : f32 to vector<128x128xf32>
    %56 = arith.maximumf %54, %55 : vector<128x128xf32>
    %57 = arith.truncf %56 : vector<128x128xf32> to vector<128x128xbf16>
    %c0_43 = arith.constant 0 : index
    %c0_44 = arith.constant 0 : index
    %c0_45 = arith.constant 0 : index
    %58 = vector.load %arg3[%c0_43, %c0_44, %c0_45] : memref<1x8x128xf32, #tpu.memory_space<vmem>>, vector<1x8x128xf32>
    %59 = vector.shape_cast %58 : vector<1x8x128xf32> to vector<8x128xf32>
    %60 = vector.extract_strided_slice %59 {offsets = [0, 0], sizes = [1, 128], strides = [1, 1]} : vector<8x128xf32> to vector<1x128xf32>
    %cst_46 = arith.constant dense<0.000000e+00> : vector<1xf32>
    %61 = vector.multi_reduction <add>, %60, %cst_46 [1] : vector<1x128xf32> to vector<1xf32>
    %62 = vector.shape_cast %61 : vector<1xf32> to vector<1x1xf32>
    %cst_47 = arith.constant 1.000000e+00 : f32
    %63 = vector.broadcast %cst_47 : f32 to vector<1x1xf32>
    %64 = arith.maximumf %62, %63 : vector<1x1xf32>
    %65 = arith.truncf %59 : vector<8x128xf32> to vector<8x128xbf16>
    %cst_48 = arith.constant dense<0.000000e+00> : vector<8x128xf32>
    %66 = tpu.matmul %65, %57, %cst_48 {dimension_numbers = #tpu.dot_dimension_numbers<[1], [0], [0], [1], [0, 0, 1, 1], [], []>} : vector<8x128xbf16>, vector<128x128xbf16>, vector<8x128xf32> -> vector<8x128xf32>
    %cst_49 = arith.constant 1.000000e+00 : f32
    %67 = vector.broadcast %cst_49 : f32 to vector<1x1xf32>
    %68 = arith.divf %67, %64 : vector<1x1xf32>
    %69 = vector.broadcast %68 : vector<1x1xf32> to vector<8x128xf32>
    %70 = arith.mulf %66, %69 : vector<8x128xf32>
    %71 = arith.truncf %70 : vector<8x128xf32> to vector<8x128xbf16>
    %c0_50 = arith.constant 0 : index
    %c0_51 = arith.constant 0 : index
    %72 = vector.load %arg16[%c0_50, %c0_51] : memref<128x128xbf16, #tpu.memory_space<vmem>>, vector<128x128xbf16>
    %cst_52 = arith.constant dense<0.000000e+00> : vector<8x128xf32>
    %73 = tpu.matmul %71, %72, %cst_52 {dimension_numbers = #tpu.dot_dimension_numbers<[1], [0], [0], [1], [0, 0, 1, 1], [], []>} : vector<8x128xbf16>, vector<128x128xbf16>, vector<8x128xf32> -> vector<8x128xf32>
    %c0_53 = arith.constant 0 : index
    %c0_54 = arith.constant 0 : index
    %74 = vector.load %arg17[%c0_53, %c0_54] : memref<1x128xf32, #tpu.memory_space<vmem>>, vector<1x128xf32>
    %75 = vector.broadcast %74 : vector<1x128xf32> to vector<8x128xf32>
    %76 = arith.addf %73, %75 : vector<8x128xf32>
    %c0_55 = arith.constant 0 : index
    %c0_56 = arith.constant 0 : index
    %c0_57 = arith.constant 0 : index
    %77 = vector.load %arg18[%c0_55, %c0_56, %c0_57] : memref<1x8x128xf32, #tpu.memory_space<vmem>>, vector<1x8x128xf32>
    %78 = vector.shape_cast %77 : vector<1x8x128xf32> to vector<8x128xf32>
    %79 = vector.shape_cast %76 : vector<8x128xf32> to vector<1x8x128xf32>
    tpu.vector_store %arg18[%c0_55, %c0_56, %c0_57], %79 {strides = array<i32>} : memref<1x8x128xf32, #tpu.memory_space<vmem>>, vector<1x8x128xf32>,
    return
  }
  func.func @transform_0(%arg0: i32) -> (i32, i32, i32) {
    %c0_i32 = arith.constant 0 : i32
    %c0_i32_0 = arith.constant 0 : i32
    %c0_i32_1 = arith.constant 0 : i32
    return %arg0, %c0_i32, %c0_i32_0 : i32, i32, i32
  }
  func.func @transform_1(%arg0: i32) -> (i32, i32, i32) {
    %c0_i32 = arith.constant 0 : i32
    %c0_i32_0 = arith.constant 0 : i32
    %c0_i32_1 = arith.constant 0 : i32
    return %arg0, %c0_i32, %c0_i32_0 : i32, i32, i32
  }
  func.func @transform_2(%arg0: i32) -> (i32, i32, i32) {
    %c0_i32 = arith.constant 0 : i32
    %c0_i32_0 = arith.constant 0 : i32
    %c0_i32_1 = arith.constant 0 : i32
    return %arg0, %c0_i32, %c0_i32_0 : i32, i32, i32
  }
  func.func @transform_3(%arg0: i32) -> (i32, i32) {
    %c0_i32 = arith.constant 0 : i32
    %c0_i32_0 = arith.constant 0 : i32
    %c0_i32_1 = arith.constant 0 : i32
    return %c0_i32, %c0_i32_0 : i32, i32
  }
  func.func @transform_4(%arg0: i32) -> (i32, i32) {
    %c0_i32 = arith.constant 0 : i32
    %c0_i32_0 = arith.constant 0 : i32
    %c0_i32_1 = arith.constant 0 : i32
    return %c0_i32, %c0_i32_0 : i32, i32
  }
  func.func @transform_5(%arg0: i32) -> (i32, i32) {
    %c0_i32 = arith.constant 0 : i32
    %c0_i32_0 = arith.constant 0 : i32
    %c0_i32_1 = arith.constant 0 : i32
    return %c0_i32, %c0_i32_0 : i32, i32
  }
  func.func @transform_6(%arg0: i32) -> (i32, i32) {
    %c0_i32 = arith.constant 0 : i32
    %c0_i32_0 = arith.constant 0 : i32
    %c0_i32_1 = arith.constant 0 : i32
    return %c0_i32, %c0_i32_0 : i32, i32
  }
  func.func @transform_7(%arg0: i32) -> (i32, i32) {
    %c0_i32 = arith.constant 0 : i32
    %c0_i32_0 = arith.constant 0 : i32
    %c0_i32_1 = arith.constant 0 : i32
    return %c0_i32, %c0_i32_0 : i32, i32
  }
  func.func @transform_8(%arg0: i32) -> (i32, i32) {
    %c0_i32 = arith.constant 0 : i32
    %c0_i32_0 = arith.constant 0 : i32
    %c0_i32_1 = arith.constant 0 : i32
    return %c0_i32, %c0_i32_0 : i32, i32
  }
  func.func @transform_9(%arg0: i32) -> (i32, i32) {
    %c0_i32 = arith.constant 0 : i32
    %c0_i32_0 = arith.constant 0 : i32
    %c0_i32_1 = arith.constant 0 : i32
    return %c0_i32, %c0_i32_0 : i32, i32
  }
  func.func @transform_10(%arg0: i32) -> (i32, i32) {
    %c0_i32 = arith.constant 0 : i32
    %c0_i32_0 = arith.constant 0 : i32
    %c0_i32_1 = arith.constant 0 : i32
    return %c0_i32, %c0_i32_0 : i32, i32
  }
  func.func @transform_11(%arg0: i32) -> (i32, i32) {
    %c0_i32 = arith.constant 0 : i32
    %c0_i32_0 = arith.constant 0 : i32
    %c0_i32_1 = arith.constant 0 : i32
    return %c0_i32, %c0_i32_0 : i32, i32
  }
  func.func @transform_12(%arg0: i32) -> (i32, i32) {
    %c0_i32 = arith.constant 0 : i32
    %c0_i32_0 = arith.constant 0 : i32
    %c0_i32_1 = arith.constant 0 : i32
    return %c0_i32, %c0_i32_0 : i32, i32
  }
  func.func @transform_13(%arg0: i32) -> (i32, i32) {
    %c0_i32 = arith.constant 0 : i32
    %c0_i32_0 = arith.constant 0 : i32
    %c0_i32_1 = arith.constant 0 : i32
    return %c0_i32, %c0_i32_0 : i32, i32
  }
  func.func @transform_14(%arg0: i32) -> (i32, i32) {
    %c0_i32 = arith.constant 0 : i32
    %c0_i32_0 = arith.constant 0 : i32
    %c0_i32_1 = arith.constant 0 : i32
    return %c0_i32, %c0_i32_0 : i32, i32
  }
  func.func @transform_15(%arg0: i32) -> (i32, i32) {
    %c0_i32 = arith.constant 0 : i32
    %c0_i32_0 = arith.constant 0 : i32
    %c0_i32_1 = arith.constant 0 : i32
    return %c0_i32, %c0_i32_0 : i32, i32
  }
  func.func @transform_16(%arg0: i32) -> (i32, i32) {
    %c0_i32 = arith.constant 0 : i32
    %c0_i32_0 = arith.constant 0 : i32
    %c0_i32_1 = arith.constant 0 : i32
    return %c0_i32, %c0_i32_0 : i32, i32
  }
  func.func @transform_17(%arg0: i32) -> (i32, i32, i32) {
    %c0_i32 = arith.constant 0 : i32
    %c0_i32_0 = arith.constant 0 : i32
    %c0_i32_1 = arith.constant 0 : i32
    return %arg0, %c0_i32, %c0_i32_0 : i32, i32, i32
  }
}

</mosaic_0001>

<bundles_post_ra>
// kernel: _forward_impl.1
= control target key start
LH: loop header
LB: loop body
LE: loop exit
PB: predicated region body
PF: predicated region fallthrough
CT: control target
= control target key end

     0   :  { %s3194_s24 = smov 0   ;;  %s3497_s0 = inlined_call_operand.vmem [shape: bf16[2,128,128], index: 0, kind: input, shape index: {}]   ;;  %s3498_s1 = inlined_call_operand.vmem [shape: bf16[2,128,128], index: 1, kind: input, shape index: {}]   ;;  %s3499_s2 = inlined_call_operand.vmem [shape: f32[2,8,128], index: 2, kind: input, shape index: {}]   ;;  %s3500_s3 = inlined_call_operand.vmem [shape: bf16[128,128], index: 3, kind: input, shape index: {}]   ;;  %s3501_s4 = inlined_call_operand.vmem [shape: f32[1,128], index: 4, kind: input, shape index: {}]   ;;  %s3502_s5 = inlined_call_operand.vmem [shape: bf16[128,128], index: 5, kind: input, shape index: {}]   ;;  %s3503_s6 = inlined_call_operand.vmem [shape: f32[1,128], index: 6, kind: input, shape index: {}]   ;;  %s3504_s7 = inlined_call_operand.vmem [shape: bf16[128,128], index: 7, kind: input, shape index: {}]   ;;  %s3505_s8 = inlined_call_operand.vmem [shape: f32[1,128], index: 8, kind: input, shape index: {}]   ;;  %s3506_s9 = inlined_call_operand.vmem [shape: bf16[128,128], index: 9, kind: input, shape index: {}]   ;;  %s3507_s10 = inlined_call_operand.vmem [shape: f32[1,128], index: 10, kind: input, shape index: {}]   ;;  %s3508_s11 = inlined_call_operand.vmem [shape: bf16[128,128], index: 11, kind: input, shape index: {}]   ;;  %s3509_s12 = inlined_call_operand.vmem [shape: f32[1,128], index: 12, kind: input, shape index: {}]   ;;  %s3510_s13 = inlined_call_operand.vmem [shape: bf16[128,128], index: 13, kind: input, shape index: {}]   ;;  %s3511_s14 = inlined_call_operand.vmem [shape: f32[1,128], index: 14, kind: input, shape index: {}]   ;;  %s3512_s15 = inlined_call_operand.vmem [shape: bf16[128,128], index: 15, kind: input, shape index: {}]   ;;  %s3513_s16 = inlined_call_operand.vmem [shape: f32[1,128], index: 16, kind: input, shape index: {}]   ;;  %s3514_s17 = inlined_call_operand.vmem [shape: f32[2,8,128], index: 17, kind: output, shape index: {}]  }
   0x1   :  { %3515 = sst [smem:[#allocation2_spill]] %s3497_s0 }
   0x2   :  { %3516 = sst [smem:[#allocation3_spill]] %s3498_s1 }
   0x3 LB: > { %s2424_s25 = sadd.s32 4294967295, %s3100_s24   ;;  %p2428_p0 = scmp.ge.s32.totalorder %s3100_s24, 1  ;;  %s3100_s24 = sphi %s3194_s24, %s27_s24  }
   0x4   : > { %p506_p1 = scmp.lt.s32.totalorder %s3100_s24, 3 }
   0x6   : > { %p507_p2 = pnand %p2428_p0, %p506_p1 }
   0x7   : > { %p566_p3 = scmp.lt.s32.totalorder (!%p507_p2), %s2424_s25, 1  ;;  %v3034_v0 = vld [vmem:[%s3500_s3] sm:$0xff] (!%p507_p2)   ;;  %v3035_v1 = vld [vmem:[%s3500_s3 + $0x8] sm:$0xff] (!%p507_p2)   ;;  %v3036_v2 = vld [vmem:[%s3500_s3 + $0x10] sm:$0xff] (!%p507_p2)   ;;  %s3517_s20 = sld [smem:[#allocation2_spill]] (!%p507_p2)  ;;  %vm3103_vm0 = vmmov (!%p507_p2), 0  }
   0x8   : > { %510 = sbr.rel (%p507_p2) target bundleno = 2560 (0xa00), region = 88  ;;  %2712 = vmatprep.subr.bf16.mxu1 (!%p507_p2), %v3034_v0  ;;  %v3037_v5 = vld [vmem:[%s3500_s3 + $0x18] sm:$0xff] (!%p507_p2)   ;;  %s3518_s28 = sld [smem:[#allocation3_spill]] (!%p507_p2)  ;;  %v3038_v7 = vld [vmem:[%s3500_s3 + $0x20] sm:$0xff] (!%p507_p2)   ;;  %v3039_v10 = vld [vmem:[%s3500_s3 + $0x28] sm:$0xff] (!%p507_p2)   ;;  %vm2181_vm1 = vcmask (!%p507_p2), 1040384  }
   0x9   : > { %2713 = vmatpush3.bf16.msra.mxu1 (!%p507_p2), %v3034_v0  ;;  %v3040_v13 = vld [vmem:[%s3500_s3 + $0x30] sm:$0xff] (!%p507_p2)   ;;  %v3041_v23 = vld [vmem:[%s3500_s3 + $0x38] sm:$0xff] (!%p507_p2)   ;;  %v3042_v24 = vld [vmem:[%s3502_s5] sm:$0xff] (!%p507_p2)  }
   0xa   : > { %2714 = vmatprep.subr.bf16.mxu1 (!%p507_p2), %v3035_v1  ;;  %v3043_v25 = vld [vmem:[%s3502_s5 + $0x8] sm:$0xff] (!%p507_p2)   ;;  %v3044_v26 = vld [vmem:[%s3502_s5 + $0x10] sm:$0xff] (!%p507_p2)   ;;  %v3045_v27 = vld [vmem:[%s3502_s5 + $0x18] sm:$0xff] (!%p507_p2)  }
   0xb   : > { %v3046_v28 = vld [vmem:[%s3502_s5 + $0x20] sm:$0xff] (!%p507_p2)   ;;  %v3047_v29 = vld [vmem:[%s3502_s5 + $0x28] sm:$0xff] (!%p507_p2)   ;;  %v3048_v54 = vld [vmem:[%s3502_s5 + $0x30] sm:$0xff] (!%p507_p2)  }
   0xc   : > { %v3049_v55 = vld [vmem:[%s3502_s5 + $0x38] sm:$0xff] (!%p507_p2)   ;;  %v2451_v56 = vld [vmem:[%s3501_s4] ss:$0 sm:$0xff] (!%p507_p2) }
   0xd   : > { %2715 = vmatpush3.bf16.msra.mxu1 (!%p507_p2), %v3035_v1 }
   0xe   : > { %2716 = vmatprep.subr.bf16.mxu1 (!%p507_p2), %v3036_v2 }
   0xf   : > { %s3520_s25 = smov (!%p566_p3, %s2424_s25), 1 }
  0x10   : > { %s2516_s0 = sshll.u32 %s3520_s25, 6  ;;  %s2433_s30 = sshll.u32 %s3520_s25, 3 }
  0x11   : > { %s3217_s21 = scalar_lea.vmem %s3517_s20, %s2516_s0  ;;  %s3228_s29 = scalar_lea.vmem %s3518_s28, %s2516_s0  ;;  %2717 = vmatpush3.bf16.msra.mxu1 %v3036_v2 }
  0x12   : > { %v3018_v3 = vld [vmem:[%s3217_s21] sm:$0xff]   ;;  %v3019_v4 = vld [vmem:[%s3217_s21 + $0x8] sm:$0xff]   ;;  %v3020_v6 = vld [vmem:[%s3217_s21 + $0x10] sm:$0xff]   ;;  %2718 = vmatprep.subr.bf16.mxu1 %v3037_v5  ;;  %s579_s19 = scalar_lea.vmem %s3499_s2, %s2433_s30  ;;  %s583_s0 = scalar_lea.vmem %s3514_s17, %s2433_s30 }
  0x13   : > { %2680 = vmatprep.subr.bf16.mxu0 %v3018_v3  ;;  %v3021_v8 = vld [vmem:[%s3217_s21 + $0x18] sm:$0xff]   ;;  %v3235_v9 = vld [vmem:[%s3228_s29] sm:$0xff]   ;;  %v3023_v12 = vld [vmem:[%s3217_s21 + $0x28] sm:$0xff]  }
  0x14   : > { %2681 = vmatpush3.bf16.msra.mxu0 %v3018_v3  ;;  %2696 = vmatprep.mubr.bf16.mxu0 %v3235_v9  ;;  %v3022_v11 = vld [vmem:[%s3217_s21 + $0x20] sm:$0xff]   ;;  %v3024_v14 = vld [vmem:[%s3217_s21 + $0x30] sm:$0xff]   ;;  %v3025_v15 = vld [vmem:[%s3217_s21 + $0x38] sm:$0xff]  }
  0x15   : > { %2682 = vmatprep.subr.bf16.mxu0 %v3019_v4  ;;  %2719 = vmatpush3.bf16.msra.mxu1 %v3037_v5  ;;  %v3249_v16 = vld [vmem:[%s3228_s29 + $0x8] sm:$0xff]   ;;  %v3252_v17 = vld [vmem:[%s3228_s29 + $0x10] sm:$0xff]   ;;  %v3257_v18 = vld [vmem:[%s3228_s29 + $0x18] sm:$0xff]  }
  0x16   : > { %2720 = vmatprep.subr.bf16.mxu1 %v3038_v7  ;;  %v3260_v19 = vld [vmem:[%s3228_s29 + $0x20] sm:$0xff]   ;;  %v3265_v20 = vld [vmem:[%s3228_s29 + $0x28] sm:$0xff]   ;;  %v3268_v21 = vld [vmem:[%s3228_s29 + $0x30] sm:$0xff]  }
  0x17   : > { %v3273_v22 = vld [vmem:[%s3228_s29 + $0x38] sm:$0xff]  }
  0x18   : > { %2683 = vmatpush3.bf16.msra.mxu0 %v3019_v4 }
  0x19   : > { %2684 = vmatprep.subr.bf16.mxu0 %v3020_v6  ;;  %2721 = vmatpush3.bf16.msra.mxu1 %v3038_v7 }
  0x1a   : > { %2722 = vmatprep.subr.bf16.mxu1 %v3039_v10 }
  0x1c   : > { %2685 = vmatpush3.bf16.msra.mxu0 %v3020_v6 }
  0x1d   : > { %2686 = vmatprep.subr.bf16.mxu0 %v3021_v8  ;;  %2723 = vmatpush3.bf16.msra.mxu1 %v3039_v10 }
  0x1e   : > { %2724 = vmatprep.subr.bf16.mxu1 %v3040_v13 }
  0x20   : > { %2687 = vmatpush3.bf16.msra.mxu0 %v3021_v8 }
  0x21   : > { %2688 = vmatprep.subr.bf16.mxu0 %v3022_v11  ;;  %2725 = vmatpush3.bf16.msra.mxu1 %v3040_v13 }
  0x22   : > { %2726 = vmatprep.subr.bf16.mxu1 %v3041_v23 }
  0x24   : > { %2689 = vmatpush3.bf16.msra.mxu0 %v3022_v11 }
  0x25   : > { %2690 = vmatprep.subr.bf16.mxu0 %v3023_v12  ;;  %2727 = vmatpush3.bf16.msra.mxu1 %v3041_v23 }
  0x28   : > { %2691 = vmatpush3.bf16.msra.mxu0 %v3023_v12 }
  0x29   : > { %2692 = vmatprep.subr.bf16.mxu0 %v3024_v14 }
  0x2c   : > { %2693 = vmatpush3.bf16.msra.mxu0 %v3024_v14 }
  0x2d   : > { %2694 = vmatprep.subr.bf16.mxu0 %v3025_v15 }
  0x30   : > { %2695 = vmatpush3.bf16.msra.mxu0 %v3025_v15 }
  0x31   : > { %2744 = vmatprep.subr.bf16.mxu0 %v3042_v24 }
  0x33   : > { %2697 = vmatmul.mubr.bf16.vlgmr.msra.gmra.mrb[0].mxu0 %v3249_v16 }
  0x34   : > { %2700 = vmatprep.mubr.bf16.mxu0 %v3252_v17  ;;  %2745 = vmatpush3.bf16.msra.mxu0 %v3042_v24 }
  0x35   : > { %2746 = vmatprep.subr.bf16.mxu0 %v3043_v25 }
  0x38   : > { %2747 = vmatpush3.bf16.msra.mxu0 %v3043_v25 }
  0x39   : > { %2748 = vmatprep.subr.bf16.mxu0 %v3044_v26 }
  0x3b   : > { %2701 = vmatmul.mubr.bf16.gmra.mrb[4].mxu0 %v3257_v18 }
  0x3c   : > { %2704 = vmatprep.mubr.bf16.mxu0 %v3260_v19  ;;  %2749 = vmatpush3.bf16.msra.mxu0 %v3044_v26 }
  0x3d   : > { %2750 = vmatprep.subr.bf16.mxu0 %v3045_v27 }
  0x40   : > { %2751 = vmatpush3.bf16.msra.mxu0 %v3045_v27 }
  0x41   : > { %2752 = vmatprep.subr.bf16.mxu0 %v3046_v28 }
  0x43   : > { %2705 = vmatmul.mubr.bf16.gmra.mrb[8].mxu0 %v3265_v20 }
  0x44   : > { %2708 = vmatprep.mubr.bf16.mxu0 %v3268_v21  ;;  %2753 = vmatpush3.bf16.msra.mxu0 %v3046_v28 }
  0x45   : > { %2754 = vmatprep.subr.bf16.mxu0 %v3047_v29 }
  0x48   : > { %2755 = vmatpush3.bf16.msra.mxu0 %v3047_v29 }
  0x49   : > { %2756 = vmatprep.subr.bf16.mxu0 %v3048_v54 }
  0x4b   : > { %2709 = vmatmul.mubr.bf16.gmra.mrb[12].mxu0 %v3273_v22 }
  0x4c   : > { %2757 = vmatpush3.bf16.msra.mxu0 %v3048_v54 }
  0x4d   : > { %2758 = vmatprep.subr.bf16.mxu0 %v3049_v55 }
  0x50   : > { %2759 = vmatpush3.bf16.msra.mxu0 %v3049_v55 }
 0x106   : > { %v2698_v30 = vpop.f32.mrb[0].mxu0 }
 0x107   : > { %v781_v31 = vpop.f32.mrb[1].mxu0 }
 0x108   : > { %v2699_v32 = vpop.f32.mrb[2].mxu0 }
 0x109   : > { %v845_v33 = vpack.c.bf16 %v2699_v32, %v2698_v30  ;;  %v784_v34 = vpop.f32.mrb[3].mxu0 }
 0x10a   : > { %v844_v35 = vpack.c.bf16 %v784_v34, %v781_v31 }
 0x10c   : > { %2728 = vmatprep.mubr.bf16.mxu1 %v844_v35 }
 0x10d   : > { %2729 = vmatmul.mubr.bf16.vlgmr.msra.gmra.mrb[0].mxu1 %v845_v33 }
 0x10e   : > { %v2702_v36 = vpop.f32.mrb[4].mxu0 }
 0x10f   : > { %v797_v37 = vpop.f32.mrb[5].mxu0 }
 0x110   : > { %v2703_v38 = vpop.f32.mrb[6].mxu0 }
 0x111   : > { %v847_v39 = vpack.c.bf16 %v2703_v38, %v2702_v36  ;;  %v800_v40 = vpop.f32.mrb[7].mxu0 }
 0x112   : > { %v846_v41 = vpack.c.bf16 %v800_v40, %v797_v37 }
 0x114   : > { %2732 = vmatprep.mubr.bf16.mxu1 %v846_v41 }
 0x115   : > { %2733 = vmatmul.mubr.bf16.gmra.mrb[4].mxu1 %v847_v39 }
 0x116   : > { %v2706_v42 = vpop.f32.mrb[8].mxu0 }
 0x117   : > { %v813_v43 = vpop.f32.mrb[9].mxu0 }
 0x118   : > { %v2707_v44 = vpop.f32.mrb[10].mxu0 }
 0x119   : > { %v849_v45 = vpack.c.bf16 %v2707_v44, %v2706_v42  ;;  %v816_v46 = vpop.f32.mrb[11].mxu0 }
 0x11a   : > { %v848_v47 = vpack.c.bf16 %v816_v46, %v813_v43 }
 0x11c   : > { %2736 = vmatprep.mubr.bf16.mxu1 %v848_v47 }
 0x11d   : > { %2737 = vmatmul.mubr.bf16.gmra.mrb[8].mxu1 %v849_v45 }
 0x11e   : > { %v2710_v48 = vpop.f32.mrb[12].mxu0 }
 0x11f   : > { %v829_v49 = vpop.f32.mrb[13].mxu0 }
 0x120   : > { %v2711_v50 = vpop.f32.mrb[14].mxu0 }
 0x121   : > { %v851_v51 = vpack.c.bf16 %v2711_v50, %v2710_v48  ;;  %v832_v52 = vpop.f32.mrb[15].mxu0 }
 0x122   : > { %v850_v53 = vpack.c.bf16 %v832_v52, %v829_v49 }
 0x124   : > { %2740 = vmatprep.mubr.bf16.mxu1 %v850_v53 }
 0x125   : > { %2741 = vmatmul.mubr.bf16.gmra.mrb[12].mxu1 %v851_v51 }
 0x126   : > { %2792 = vmatprep.mubr.bf16.mxu1 %v3235_v9 }
 0x1e0   : > { %v2730_v57 = vpop.f32.mrb[0].mxu1 }
 0x1e1   : > { %v949_v58 = vadd.f32 %v2730_v57, %v2451_v56  ;;  %v940_v59 = vpop.f32.mrb[1].mxu1 }
 0x1e2   : > { %v941_v60 = vadd.f32 %v2451_v56, %v940_v59  ;;  %v2731_v61 = vpop.f32.mrb[2].mxu1  ;;  %v3051_v59 = vld [vmem:[%s3504_s7 + $0x8] sm:$0xff]  }
 0x1e3   : > { %v952_v62 = vadd.f32 %v2731_v61, %v2451_v56  ;;  %v943_v63 = vpop.f32.mrb[3].mxu1  ;;  %v1005_v1 = vmax.f32 %v949_v58, 0.0  ;;  %v3050_v58 = vld [vmem:[%s3504_s7] sm:$0xff]  }
 0x1e4   : > { %v944_v0 = vadd.f32 %v2451_v56, %v943_v63  ;;  %v1003_v3 = vmax.f32 %v941_v60, 0.0  ;;  %2808 = vmatprep.subr.bf16.mxu0 %v3050_v58  ;;  %v3053_v60 = vld [vmem:[%s3504_s7 + $0x18] sm:$0xff]   ;;  %v3054_v61 = vld [vmem:[%s3504_s7 + $0x20] sm:$0xff]   ;;  %v3056_v63 = vld [vmem:[%s3504_s7 + $0x30] sm:$0xff]  }
 0x1e5   : > { %v1006_v2 = vmax.f32 %v952_v62, 0.0  ;;  %v3055_v62 = vld [vmem:[%s3504_s7 + $0x28] sm:$0xff]  }
 0x1e6   : > { %v1004_v4 = vmax.f32 %v944_v0, 0.0  ;;  %v2460_v0 = vld [vmem:[%s3503_s6] ss:$0 sm:$0xff] }
 0x1e7   : > { %v1020_v5 = vpack.c.bf16 %v1006_v2, %v1005_v1 }
 0x1e8   : > { %v1019_v6 = vpack.c.bf16 %v1004_v4, %v1003_v3  ;;  %v2734_v7 = vpop.f32.mrb[4].mxu1 }
 0x1e9   : > { %v965_v8 = vadd.f32 %v2734_v7, %v2451_v56  ;;  %v956_v10 = vpop.f32.mrb[5].mxu1 }
 0x1ea   : > { %v957_v11 = vadd.f32 %v2451_v56, %v956_v10  ;;  %v2735_v12 = vpop.f32.mrb[6].mxu1  ;;  %2760 = vmatprep.mubr.bf16.mxu0 %v1019_v6 }
 0x1eb   : > { %v968_v13 = vadd.f32 %v2735_v12, %v2451_v56  ;;  %v959_v14 = vpop.f32.mrb[7].mxu1  ;;  %2761 = vmatmul.mubr.bf16.vlgmr.msra.gmra.mrb[16].mxu0 %v1020_v5  ;;  %v1009_v23 = vmax.f32 %v965_v8, 0.0 }
 0x1ec   : > { %v960_v15 = vadd.f32 %v2451_v56, %v959_v14  ;;  %v1007_v25 = vmax.f32 %v957_v11, 0.0  ;;  %2809 = vmatpush3.bf16.msra.mxu0 %v3050_v58 }
 0x1ed   : > { %v1010_v24 = vmax.f32 %v968_v13, 0.0  ;;  %2810 = vmatprep.subr.bf16.mxu0 %v3051_v59 }
 0x1ee   : > { %v1008_v26 = vmax.f32 %v960_v15, 0.0 }
 0x1ef   : > { %v1022_v27 = vpack.c.bf16 %v1010_v24, %v1009_v23 }
 0x1f0   : > { %v1021_v28 = vpack.c.bf16 %v1008_v26, %v1007_v25  ;;  %v2738_v29 = vpop.f32.mrb[8].mxu1  ;;  %2811 = vmatpush3.bf16.msra.mxu0 %v3051_v59 }
 0x1f1   : > { %v981_v30 = vadd.f32 %v2738_v29, %v2451_v56  ;;  %v972_v31 = vpop.f32.mrb[9].mxu1 }
 0x1f2   : > { %v973_v32 = vadd.f32 %v2451_v56, %v972_v31  ;;  %v2739_v33 = vpop.f32.mrb[10].mxu1  ;;  %2764 = vmatprep.mubr.bf16.mxu0 %v1021_v28 }
 0x1f3   : > { %v984_v34 = vadd.f32 %v2739_v33, %v2451_v56  ;;  %v975_v35 = vpop.f32.mrb[11].mxu1  ;;  %2765 = vmatmul.mubr.bf16.gmra.mrb[20].mxu0 %v1022_v27  ;;  %v1013_v37 = vmax.f32 %v981_v30, 0.0 }
 0x1f4   : > { %v976_v36 = vadd.f32 %v2451_v56, %v975_v35  ;;  %v1011_v39 = vmax.f32 %v973_v32, 0.0 }
 0x1f5   : > { %v1014_v38 = vmax.f32 %v984_v34, 0.0 }
 0x1f6   : > { %v1012_v40 = vmax.f32 %v976_v36, 0.0 }
 0x1f7   : > { %v1024_v41 = vpack.c.bf16 %v1014_v38, %v1013_v37 }
 0x1f8   : > { %v1023_v42 = vpack.c.bf16 %v1012_v40, %v1011_v39  ;;  %v2742_v43 = vpop.f32.mrb[12].mxu1 }
 0x1f9   : > { %v997_v44 = vadd.f32 %v2742_v43, %v2451_v56  ;;  %v988_v45 = vpop.f32.mrb[13].mxu1 }
 0x1fa   : > { %v989_v46 = vadd.f32 %v2451_v56, %v988_v45  ;;  %v2743_v47 = vpop.f32.mrb[14].mxu1  ;;  %2768 = vmatprep.mubr.bf16.mxu0 %v1023_v42 }
 0x1fb   : > { %v1000_v48 = vadd.f32 %v2743_v47, %v2451_v56  ;;  %v991_v49 = vpop.f32.mrb[15].mxu1  ;;  %2769 = vmatmul.mubr.bf16.gmra.mrb[24].mxu0 %v1024_v41  ;;  %v1017_v51 = vmax.f32 %v997_v44, 0.0 }
 0x1fc   : > { %v992_v50 = vadd.f32 %v2451_v56, %v991_v49  ;;  %v1015_v53 = vmax.f32 %v989_v46, 0.0  ;;  %v3052_v56 = vld [vmem:[%s3504_s7 + $0x10] sm:$0xff]  }
 0x1fd   : > { %v1018_v52 = vmax.f32 %v1000_v48, 0.0  ;;  %2812 = vmatprep.subr.bf16.mxu0 %v3052_v56 }
 0x1fe   : > { %v1016_v54 = vmax.f32 %v992_v50, 0.0  ;;  %2813 = vmatpush3.bf16.msra.mxu0 %v3052_v56 }
 0x1ff   : > { %v1026_v55 = vpack.c.bf16 %v1018_v52, %v1017_v51  ;;  %2814 = vmatprep.subr.bf16.mxu0 %v3053_v60 }
 0x200   : > { %v1025_v57 = vpack.c.bf16 %v1016_v54, %v1015_v53 }
 0x202   : > { %2772 = vmatprep.mubr.bf16.mxu0 %v1025_v57  ;;  %2815 = vmatpush3.bf16.msra.mxu0 %v3053_v60 }
 0x203   : > { %2773 = vmatmul.mubr.bf16.gmra.mrb[28].mxu0 %v1026_v55  ;;  %2816 = vmatprep.subr.bf16.mxu0 %v3054_v61 }
 0x206   : > { %2817 = vmatpush3.bf16.msra.mxu0 %v3054_v61 }
 0x207   : > { %2818 = vmatprep.subr.bf16.mxu0 %v3055_v62 }
 0x20a   : > { %2819 = vmatpush3.bf16.msra.mxu0 %v3055_v62 }
 0x20b   : > { %2820 = vmatprep.subr.bf16.mxu0 %v3056_v63 }
 0x20e   : > { %2821 = vmatpush3.bf16.msra.mxu0 %v3056_v63 }
 0x2be   : > { %v2762_v1 = vpop.f32.mrb[16].mxu0 }
 0x2bf   : > { %v1124_v2 = vadd.f32 %v2762_v1, %v2460_v0  ;;  %v1115_v3 = vpop.f32.mrb[17].mxu0 }
 0x2c0   : > { %v1116_v4 = vadd.f32 %v2460_v0, %v1115_v3  ;;  %v2763_v5 = vpop.f32.mrb[18].mxu0  ;;  %v3061_v3 = vld [vmem:[%s3506_s9 + $0x18] sm:$0xff]  }
 0x2c1   : > { %v1127_v6 = vadd.f32 %v2763_v5, %v2460_v0  ;;  %v1118_v7 = vpop.f32.mrb[19].mxu0  ;;  %v1180_v10 = vmax.f32 %v1124_v2, 0.0  ;;  %v3060_v2 = vld [vmem:[%s3506_s9 + $0x10] sm:$0xff]   ;;  %v3063_v5 = vld [vmem:[%s3506_s9 + $0x28] sm:$0xff]  }
 0x2c2   : > { %v1119_v8 = vadd.f32 %v2460_v0, %v1118_v7  ;;  %v1178_v12 = vmax.f32 %v1116_v4, 0.0  ;;  %v3062_v4 = vld [vmem:[%s3506_s9 + $0x20] sm:$0xff]  }
 0x2c3   : > { %v1181_v11 = vmax.f32 %v1127_v6, 0.0 }
 0x2c4   : > { %v1179_v13 = vmax.f32 %v1119_v8, 0.0 }
 0x2c5   : > { %v1195_v14 = vpack.c.bf16 %v1181_v11, %v1180_v10 }
 0x2c6   : > { %v1194_v15 = vpack.c.bf16 %v1179_v13, %v1178_v12  ;;  %v2766_v23 = vpop.f32.mrb[20].mxu0 }
 0x2c7   : > { %v1140_v24 = vadd.f32 %v2766_v23, %v2460_v0  ;;  %v1131_v25 = vpop.f32.mrb[21].mxu0 }
 0x2c8   : > { %v1132_v26 = vadd.f32 %v2460_v0, %v1131_v25  ;;  %v2767_v27 = vpop.f32.mrb[22].mxu0  ;;  %2776 = vmatprep.subr.bf16.mxu1 %v1194_v15 }
 0x2c9   : > { %v1143_v28 = vadd.f32 %v2767_v27, %v2460_v0  ;;  %v1134_v29 = vpop.f32.mrb[23].mxu0  ;;  %2777 = vmatpush3.bf16.msra.mxu1 %v1194_v15  ;;  %v1184_v31 = vmax.f32 %v1140_v24, 0.0 }
 0x2ca   : > { %v1135_v30 = vadd.f32 %v2460_v0, %v1134_v29  ;;  %2778 = vmatprep.subr.bf16.mxu1 %v1195_v14  ;;  %v1182_v33 = vmax.f32 %v1132_v26, 0.0 }
 0x2cb   : > { %v1185_v32 = vmax.f32 %v1143_v28, 0.0 }
 0x2cc   : > { %v1183_v34 = vmax.f32 %v1135_v30, 0.0 }
 0x2cd   : > { %v1197_v35 = vpack.c.bf16 %v1185_v32, %v1184_v31  ;;  %2779 = vmatpush3.bf16.msra.mxu1 %v1195_v14 }
 0x2ce   : > { %v1196_v36 = vpack.c.bf16 %v1183_v34, %v1182_v33  ;;  %v2770_v37 = vpop.f32.mrb[24].mxu0 }
 0x2cf   : > { %v1156_v38 = vadd.f32 %v2770_v37, %v2460_v0  ;;  %v1147_v39 = vpop.f32.mrb[25].mxu0 }
 0x2d0   : > { %v1148_v40 = vadd.f32 %v2460_v0, %v1147_v39  ;;  %v2771_v41 = vpop.f32.mrb[26].mxu0  ;;  %2780 = vmatprep.subr.bf16.mxu1 %v1196_v36  ;;  %v3065_v39 = vld [vmem:[%s3506_s9 + $0x38] sm:$0xff]  }
 0x2d1   : > { %v1159_v42 = vadd.f32 %v2771_v41, %v2460_v0  ;;  %v1150_v43 = vpop.f32.mrb[27].mxu0  ;;  %2781 = vmatpush3.bf16.msra.mxu1 %v1196_v36  ;;  %v1188_v45 = vmax.f32 %v1156_v38, 0.0  ;;  %v3064_v38 = vld [vmem:[%s3506_s9 + $0x30] sm:$0xff]  }
 0x2d2   : > { %v1151_v44 = vadd.f32 %v2460_v0, %v1150_v43  ;;  %2782 = vmatprep.subr.bf16.mxu1 %v1197_v35  ;;  %v1186_v47 = vmax.f32 %v1148_v40, 0.0  ;;  %v2469_v40 = vld [vmem:[%s3505_s8] ss:$0 sm:$0xff] }
 0x2d3   : > { %v1189_v46 = vmax.f32 %v1159_v42, 0.0 }
 0x2d4   : > { %v1187_v48 = vmax.f32 %v1151_v44, 0.0 }
 0x2d5   : > { %v1199_v49 = vpack.c.bf16 %v1189_v46, %v1188_v45  ;;  %2783 = vmatpush3.bf16.msra.mxu1 %v1197_v35 }
 0x2d6   : > { %v1198_v50 = vpack.c.bf16 %v1187_v48, %v1186_v47  ;;  %v2774_v51 = vpop.f32.mrb[28].mxu0 }
 0x2d7   : > { %v1172_v52 = vadd.f32 %v2774_v51, %v2460_v0  ;;  %v1163_v53 = vpop.f32.mrb[29].mxu0 }
 0x2d8   : > { %v1164_v54 = vadd.f32 %v2460_v0, %v1163_v53  ;;  %v2775_v55 = vpop.f32.mrb[30].mxu0  ;;  %2784 = vmatprep.subr.bf16.mxu1 %v1198_v50 }
 0x2d9   : > { %v1175_v57 = vadd.f32 %v2775_v55, %v2460_v0  ;;  %v1166_v58 = vpop.f32.mrb[31].mxu0  ;;  %2785 = vmatpush3.bf16.msra.mxu1 %v1198_v50  ;;  %v1192_v56 = vmax.f32 %v1172_v52, 0.0 }
 0x2da   : > { %v1167_v59 = vadd.f32 %v2460_v0, %v1166_v58  ;;  %2786 = vmatprep.subr.bf16.mxu1 %v1199_v49  ;;  %v1190_v61 = vmax.f32 %v1164_v54, 0.0  ;;  %v3057_v0 = vld [vmem:[%s3504_s7 + $0x38] sm:$0xff]  }
 0x2db   : > { %v1193_v60 = vmax.f32 %v1175_v57, 0.0  ;;  %2822 = vmatprep.subr.bf16.mxu0 %v3057_v0 }
 0x2dc   : > { %v1191_v62 = vmax.f32 %v1167_v59, 0.0  ;;  %2823 = vmatpush3.bf16.msra.mxu0 %v3057_v0 }
 0x2dd   : > { %v1201_v63 = vpack.c.bf16 %v1193_v60, %v1192_v56  ;;  %2787 = vmatpush3.bf16.msra.mxu1 %v1199_v49 }
 0x2de   : > { %v1200_v1 = vpack.c.bf16 %v1191_v62, %v1190_v61 }
 0x2e0   : > { %2788 = vmatprep.subr.bf16.mxu1 %v1200_v1 }
 0x2e1   : > { %2789 = vmatpush3.bf16.msra.mxu1 %v1200_v1 }
 0x2e2   : > { %2790 = vmatprep.subr.bf16.mxu1 %v1201_v63 }
 0x2e5   : > { %2791 = vmatpush3.bf16.msra.mxu1 %v1201_v63 }
 0x2e8   : > { %2793 = vmatmul.mubr.bf16.vlgmr.msra.gmra.mrb[16].mxu1 %v3249_v16  ;;  %v3058_v16 = vld [vmem:[%s3506_s9] sm:$0xff]  }
 0x2e9   : > { %2796 = vmatprep.mubr.bf16.mxu1 %v3252_v17  ;;  %v3059_v17 = vld [vmem:[%s3506_s9 + $0x8] sm:$0xff]   ;;  %2840 = vmatprep.subr.bf16.mxu1 %v3058_v16 }
 0x2ea   : > { %2841 = vmatpush3.bf16.msra.mxu1 %v3058_v16 }
 0x2eb   : > { %2842 = vmatprep.subr.bf16.mxu1 %v3059_v17 }
 0x2ee   : > { %2843 = vmatpush3.bf16.msra.mxu1 %v3059_v17 }
 0x2ef   : > { %2844 = vmatprep.subr.bf16.mxu1 %v3060_v2 }
 0x2f0   : > { %2797 = vmatmul.mubr.bf16.gmra.mrb[20].mxu1 %v3257_v18 }
 0x2f1   : > { %2800 = vmatprep.mubr.bf16.mxu1 %v3260_v19 }
 0x2f2   : > { %2845 = vmatpush3.bf16.msra.mxu1 %v3060_v2 }
 0x2f3   : > { %2846 = vmatprep.subr.bf16.mxu1 %v3061_v3 }
 0x2f6   : > { %2847 = vmatpush3.bf16.msra.mxu1 %v3061_v3 }
 0x2f7   : > { %2848 = vmatprep.subr.bf16.mxu1 %v3062_v4 }
 0x2f8   : > { %2801 = vmatmul.mubr.bf16.gmra.mrb[24].mxu1 %v3265_v20 }
 0x2f9   : > { %2804 = vmatprep.mubr.bf16.mxu1 %v3268_v21 }
 0x2fa   : > { %2849 = vmatpush3.bf16.msra.mxu1 %v3062_v4 }
 0x2fb   : > { %2850 = vmatprep.subr.bf16.mxu1 %v3063_v5 }
 0x2fe   : > { %2851 = vmatpush3.bf16.msra.mxu1 %v3063_v5 }
 0x2ff   : > { %2852 = vmatprep.subr.bf16.mxu1 %v3064_v38 }
 0x300   : > { %2805 = vmatmul.mubr.bf16.gmra.mrb[28].mxu1 %v3273_v22 }
 0x302   : > { %2853 = vmatpush3.bf16.msra.mxu1 %v3064_v38  ;;  %v3066_v38 = vld [vmem:[%s3508_s11] sm:$0xff]  }
 0x303   : > { %2854 = vmatprep.subr.bf16.mxu1 %v3065_v39 }
 0x306   : > { %2855 = vmatpush3.bf16.msra.mxu1 %v3065_v39  ;;  %v3067_v39 = vld [vmem:[%s3508_s11 + $0x8] sm:$0xff]  }
 0x307   : > { %2904 = vmatprep.subr.bf16.mxu1 %v3066_v38 }
 0x3bb   : > { %v2794_v6 = vpop.f32.mrb[16].mxu1 }
 0x3bc   : > { %v1270_v7 = vpop.f32.mrb[17].mxu1 }
 0x3bd   : > { %v2795_v8 = vpop.f32.mrb[18].mxu1 }
 0x3be   : > { %v1334_v10 = vpack.c.bf16 %v2795_v8, %v2794_v6  ;;  %v1273_v11 = vpop.f32.mrb[19].mxu1 }
 0x3bf   : > { %v1333_v12 = vpack.c.bf16 %v1273_v11, %v1270_v7 }
 0x3c1   : > { %2824 = vmatprep.mubr.bf16.mxu0 %v1333_v12 }
 0x3c2   : > { %2825 = vmatmul.mubr.bf16.vlgmr.msra.gmra.mrb[32].mxu0 %v1334_v10 }
 0x3c3   : > { %v2798_v13 = vpop.f32.mrb[20].mxu1 }
 0x3c4   : > { %v1286_v14 = vpop.f32.mrb[21].mxu1 }
 0x3c5   : > { %v2799_v15 = vpop.f32.mrb[22].mxu1 }
 0x3c6   : > { %v1336_v23 = vpack.c.bf16 %v2799_v15, %v2798_v13  ;;  %v1289_v24 = vpop.f32.mrb[23].mxu1 }
 0x3c7   : > { %v1335_v25 = vpack.c.bf16 %v1289_v24, %v1286_v14 }
 0x3c9   : > { %2828 = vmatprep.mubr.bf16.mxu0 %v1335_v25 }
 0x3ca   : > { %2829 = vmatmul.mubr.bf16.gmra.mrb[36].mxu0 %v1336_v23 }
 0x3cb   : > { %v2802_v26 = vpop.f32.mrb[24].mxu1 }
 0x3cc   : > { %v1302_v27 = vpop.f32.mrb[25].mxu1 }
 0x3cd   : > { %v2803_v28 = vpop.f32.mrb[26].mxu1 }
 0x3ce   : > { %v1338_v29 = vpack.c.bf16 %v2803_v28, %v2802_v26  ;;  %v1305_v30 = vpop.f32.mrb[27].mxu1 }
 0x3cf   : > { %v1337_v31 = vpack.c.bf16 %v1305_v30, %v1302_v27 }
 0x3d1   : > { %2832 = vmatprep.mubr.bf16.mxu0 %v1337_v31 }
 0x3d2   : > { %2833 = vmatmul.mubr.bf16.gmra.mrb[40].mxu0 %v1338_v29 }
 0x3d3   : > { %v2806_v32 = vpop.f32.mrb[28].mxu1 }
 0x3d4   : > { %v1318_v33 = vpop.f32.mrb[29].mxu1 }
 0x3d5   : > { %v2807_v34 = vpop.f32.mrb[30].mxu1 }
 0x3d6   : > { %v1340_v35 = vpack.c.bf16 %v2807_v34, %v2806_v32  ;;  %v1321_v36 = vpop.f32.mrb[31].mxu1 }
 0x3d7   : > { %v1339_v37 = vpack.c.bf16 %v1321_v36, %v1318_v33 }
 0x3d9   : > { %2836 = vmatprep.mubr.bf16.mxu0 %v1339_v37 }
 0x3da   : > { %2837 = vmatmul.mubr.bf16.gmra.mrb[44].mxu0 %v1340_v35 }
 0x3db   : > { %2888 = vmatprep.mubr.bf16.mxu0 %v3235_v9 }
 0x495   : > { %v2826_v41 = vpop.f32.mrb[32].mxu0 }
 0x496   : > { %v1438_v42 = vadd.f32 %v2826_v41, %v2469_v40  ;;  %v1429_v43 = vpop.f32.mrb[33].mxu0  ;;  %v3069_v41 = vld [vmem:[%s3508_s11 + $0x18] sm:$0xff]  }
 0x497   : > { %v1430_v9 = vadd.f32 %v2469_v40, %v1429_v43  ;;  %v2827_v44 = vpop.f32.mrb[34].mxu0  ;;  %v3071_v43 = vld [vmem:[%s3508_s11 + $0x28] sm:$0xff]  }
 0x498   : > { %v1441_v45 = vadd.f32 %v2827_v44, %v2469_v40  ;;  %v1432_v46 = vpop.f32.mrb[35].mxu0  ;;  %v1494_v48 = vmax.f32 %v1438_v42, 0.0  ;;  %v3070_v42 = vld [vmem:[%s3508_s11 + $0x20] sm:$0xff]  }
 0x499   : > { %v1433_v47 = vadd.f32 %v2469_v40, %v1432_v46  ;;  %v1492_v50 = vmax.f32 %v1430_v9, 0.0  ;;  %v3072_v9 = vld [vmem:[%s3508_s11 + $0x30] sm:$0xff]   ;;  %v2478_v44 = vld [vmem:[%s3507_s10] ss:$0 sm:$0xff] }
 0x49a   : > { %v1495_v49 = vmax.f32 %v1441_v45, 0.0 }
 0x49b   : > { %v1493_v51 = vmax.f32 %v1433_v47, 0.0 }
 0x49c   : > { %v1509_v52 = vpack.c.bf16 %v1495_v49, %v1494_v48 }
 0x49d   : > { %v1508_v53 = vpack.c.bf16 %v1493_v51, %v1492_v50  ;;  %v2830_v54 = vpop.f32.mrb[36].mxu0 }
 0x49e   : > { %v1454_v55 = vadd.f32 %v2830_v54, %v2469_v40  ;;  %v1445_v57 = vpop.f32.mrb[37].mxu0 }
 0x49f   : > { %v1446_v58 = vadd.f32 %v2469_v40, %v1445_v57  ;;  %v2831_v59 = vpop.f32.mrb[38].mxu0  ;;  %2856 = vmatprep.mubr.bf16.mxu1 %v1508_v53 }
 0x4a0   : > { %v1457_v56 = vadd.f32 %v2831_v59, %v2469_v40  ;;  %v1448_v60 = vpop.f32.mrb[39].mxu0  ;;  %2857 = vmatmul.mubr.bf16.vlgmr.msra.gmra.mrb[32].mxu1 %v1509_v52  ;;  %v1498_v62 = vmax.f32 %v1454_v55, 0.0 }
 0x4a1   : > { %v1449_v61 = vadd.f32 %v2469_v40, %v1448_v60  ;;  %v1496_v1 = vmax.f32 %v1446_v58, 0.0  ;;  %2905 = vmatpush3.bf16.msra.mxu1 %v3066_v38 }
 0x4a2   : > { %v1499_v63 = vmax.f32 %v1457_v56, 0.0  ;;  %2906 = vmatprep.subr.bf16.mxu1 %v3067_v39 }
 0x4a3   : > { %v1497_v0 = vmax.f32 %v1449_v61, 0.0 }
 0x4a4   : > { %v1511_v16 = vpack.c.bf16 %v1499_v63, %v1498_v62 }
 0x4a5   : > { %v1510_v17 = vpack.c.bf16 %v1497_v0, %v1496_v1  ;;  %v2834_v2 = vpop.f32.mrb[40].mxu0  ;;  %2907 = vmatpush3.bf16.msra.mxu1 %v3067_v39 }
 0x4a6   : > { %v1470_v3 = vadd.f32 %v2834_v2, %v2469_v40  ;;  %v1461_v4 = vpop.f32.mrb[41].mxu0 }
 0x4a7   : > { %v1462_v5 = vadd.f32 %v2469_v40, %v1461_v4  ;;  %v2835_v6 = vpop.f32.mrb[42].mxu0  ;;  %2860 = vmatprep.mubr.bf16.mxu1 %v1510_v17 }
 0x4a8   : > { %v1473_v7 = vadd.f32 %v2835_v6, %v2469_v40  ;;  %v1464_v8 = vpop.f32.mrb[43].mxu0  ;;  %2861 = vmatmul.mubr.bf16.gmra.mrb[36].mxu1 %v1511_v16  ;;  %v1502_v11 = vmax.f32 %v1470_v3, 0.0 }
 0x4a9   : > { %v1465_v10 = vadd.f32 %v2469_v40, %v1464_v8  ;;  %v1500_v13 = vmax.f32 %v1462_v5, 0.0 }
 0x4aa   : > { %v1503_v12 = vmax.f32 %v1473_v7, 0.0 }
 0x4ab   : > { %v1501_v14 = vmax.f32 %v1465_v10, 0.0 }
 0x4ac   : > { %v1513_v15 = vpack.c.bf16 %v1503_v12, %v1502_v11 }
 0x4ad   : > { %v1512_v23 = vpack.c.bf16 %v1501_v14, %v1500_v13  ;;  %v2838_v24 = vpop.f32.mrb[44].mxu0 }
 0x4ae   : > { %v1486_v25 = vadd.f32 %v2838_v24, %v2469_v40  ;;  %v1477_v26 = vpop.f32.mrb[45].mxu0 }
 0x4af   : > { %v1478_v27 = vadd.f32 %v2469_v40, %v1477_v26  ;;  %v2839_v28 = vpop.f32.mrb[46].mxu0  ;;  %2864 = vmatprep.mubr.bf16.mxu1 %v1512_v23 }
 0x4b0   : > { %v1489_v29 = vadd.f32 %v2839_v28, %v2469_v40  ;;  %v1480_v30 = vpop.f32.mrb[47].mxu0  ;;  %2865 = vmatmul.mubr.bf16.gmra.mrb[40].mxu1 %v1513_v15  ;;  %v1506_v32 = vmax.f32 %v1486_v25, 0.0 }
 0x4b1   : > { %v1481_v31 = vadd.f32 %v2469_v40, %v1480_v30  ;;  %v1504_v34 = vmax.f32 %v1478_v27, 0.0  ;;  %v3068_v40 = vld [vmem:[%s3508_s11 + $0x10] sm:$0xff]  }
 0x4b2   : > { %v1507_v33 = vmax.f32 %v1489_v29, 0.0  ;;  %2908 = vmatprep.subr.bf16.mxu1 %v3068_v40 }
 0x4b3   : > { %v1505_v35 = vmax.f32 %v1481_v31, 0.0  ;;  %2909 = vmatpush3.bf16.msra.mxu1 %v3068_v40 }
 0x4b4   : > { %v1515_v36 = vpack.c.bf16 %v1507_v33, %v1506_v32  ;;  %2910 = vmatprep.subr.bf16.mxu1 %v3069_v41 }
 0x4b5   : > { %v1514_v37 = vpack.c.bf16 %v1505_v35, %v1504_v34 }
 0x4b7   : > { %2868 = vmatprep.mubr.bf16.mxu1 %v1514_v37  ;;  %2911 = vmatpush3.bf16.msra.mxu1 %v3069_v41 }
 0x4b8   : > { %2869 = vmatmul.mubr.bf16.gmra.mrb[44].mxu1 %v1515_v36  ;;  %2912 = vmatprep.subr.bf16.mxu1 %v3070_v42 }
 0x4bb   : > { %2913 = vmatpush3.bf16.msra.mxu1 %v3070_v42 }
 0x4bc   : > { %2914 = vmatprep.subr.bf16.mxu1 %v3071_v43 }
 0x4bf   : > { %2915 = vmatpush3.bf16.msra.mxu1 %v3071_v43  ;;  %v3092_v43 = vld [vmem:[%s3228_s29 + $0x8] sm:$0xff]  }
 0x4c0   : > { %2916 = vmatprep.subr.bf16.mxu1 %v3072_v9 }
 0x4c3   : > { %2917 = vmatpush3.bf16.msra.mxu1 %v3072_v9  ;;  %v3093_v9 = vld [vmem:[%s3228_s29 + $0x10] sm:$0xff]  }
 0x573   : > { %v2858_v45 = vpop.f32.mrb[32].mxu1 }
 0x574   : > { %v1613_v46 = vadd.f32 %v2858_v45, %v2478_v44  ;;  %v1604_v47 = vpop.f32.mrb[33].mxu1  ;;  %v3074_v45 = vld [vmem:[%s3510_s13] sm:$0xff]  }
 0x575   : > { %v1605_v48 = vadd.f32 %v2478_v44, %v1604_v47  ;;  %v2859_v49 = vpop.f32.mrb[34].mxu1 }
 0x576   : > { %v1616_v50 = vadd.f32 %v2859_v49, %v2478_v44  ;;  %v1607_v51 = vpop.f32.mrb[35].mxu1  ;;  %v1669_v53 = vmax.f32 %v1613_v46, 0.0 }
 0x577   : > { %v1608_v52 = vadd.f32 %v2478_v44, %v1607_v51  ;;  %v1667_v55 = vmax.f32 %v1605_v48, 0.0 }
 0x578   : > { %v1670_v54 = vmax.f32 %v1616_v50, 0.0 }
 0x579   : > { %v1668_v57 = vmax.f32 %v1608_v52, 0.0 }
 0x57a   : > { %v1684_v58 = vpack.c.bf16 %v1670_v54, %v1669_v53 }
 0x57b   : > { %v1683_v59 = vpack.c.bf16 %v1668_v57, %v1667_v55  ;;  %v2862_v56 = vpop.f32.mrb[36].mxu1 }
 0x57c   : > { %v1629_v60 = vadd.f32 %v2862_v56, %v2478_v44  ;;  %v1620_v61 = vpop.f32.mrb[37].mxu1 }
 0x57d   : > { %v1621_v62 = vadd.f32 %v2478_v44, %v1620_v61  ;;  %v2863_v63 = vpop.f32.mrb[38].mxu1  ;;  %2872 = vmatprep.subr.bf16.mxu0 %v1683_v59 }
 0x57e   : > { %v1632_v1 = vadd.f32 %v2863_v63, %v2478_v44  ;;  %v1623_v0 = vpop.f32.mrb[39].mxu1  ;;  %2873 = vmatpush3.bf16.msra.mxu0 %v1683_v59  ;;  %v1673_v17 = vmax.f32 %v1629_v60, 0.0 }
 0x57f   : > { %v1624_v16 = vadd.f32 %v2478_v44, %v1623_v0  ;;  %2874 = vmatprep.subr.bf16.mxu0 %v1684_v58  ;;  %v1671_v3 = vmax.f32 %v1621_v62, 0.0 }
 0x580   : > { %v1674_v2 = vmax.f32 %v1632_v1, 0.0 }
 0x581   : > { %v1672_v4 = vmax.f32 %v1624_v16, 0.0 }
 0x582   : > { %v1686_v5 = vpack.c.bf16 %v1674_v2, %v1673_v17  ;;  %2875 = vmatpush3.bf16.msra.mxu0 %v1684_v58 }
 0x583   : > { %v1685_v6 = vpack.c.bf16 %v1672_v4, %v1671_v3  ;;  %v2866_v7 = vpop.f32.mrb[40].mxu1  ;;  %v3080_v4 = vld [vmem:[%s3510_s13 + $0x30] sm:$0xff]  }
 0x584   : > { %v1645_v8 = vadd.f32 %v2866_v7, %v2478_v44  ;;  %v1636_v10 = vpop.f32.mrb[41].mxu1 }
 0x585   : > { %v1637_v11 = vadd.f32 %v2478_v44, %v1636_v10  ;;  %v2867_v12 = vpop.f32.mrb[42].mxu1  ;;  %2876 = vmatprep.subr.bf16.mxu0 %v1685_v6 }
 0x586   : > { %v1648_v13 = vadd.f32 %v2867_v12, %v2478_v44  ;;  %v1639_v14 = vpop.f32.mrb[43].mxu1  ;;  %2877 = vmatpush3.bf16.msra.mxu0 %v1685_v6  ;;  %v1677_v23 = vmax.f32 %v1645_v8, 0.0  ;;  %v2487_v6 = vld [vmem:[%s3509_s12] ss:$0 sm:$0xff] }
 0x587   : > { %v1640_v15 = vadd.f32 %v2478_v44, %v1639_v14  ;;  %2878 = vmatprep.subr.bf16.mxu0 %v1686_v5  ;;  %v1675_v25 = vmax.f32 %v1637_v11, 0.0 }
 0x588   : > { %v1678_v24 = vmax.f32 %v1648_v13, 0.0 }
 0x589   : > { %v1676_v26 = vmax.f32 %v1640_v15, 0.0 }
 0x58a   : > { %v1688_v27 = vpack.c.bf16 %v1678_v24, %v1677_v23  ;;  %2879 = vmatpush3.bf16.msra.mxu0 %v1686_v5  ;;  %v3081_v5 = vld [vmem:[%s3510_s13 + $0x38] sm:$0xff]  }
 0x58b   : > { %v1687_v28 = vpack.c.bf16 %v1676_v26, %v1675_v25  ;;  %v2870_v29 = vpop.f32.mrb[44].mxu1 }
 0x58c   : > { %v1661_v30 = vadd.f32 %v2870_v29, %v2478_v44  ;;  %v1652_v31 = vpop.f32.mrb[45].mxu1 }
 0x58d   : > { %v1653_v32 = vadd.f32 %v2478_v44, %v1652_v31  ;;  %v2871_v33 = vpop.f32.mrb[46].mxu1  ;;  %2880 = vmatprep.subr.bf16.mxu0 %v1687_v28 }
 0x58e   : > { %v1664_v34 = vadd.f32 %v2871_v33, %v2478_v44  ;;  %v1655_v35 = vpop.f32.mrb[47].mxu1  ;;  %2881 = vmatpush3.bf16.msra.mxu0 %v1687_v28  ;;  %v1681_v37 = vmax.f32 %v1661_v30, 0.0 }
 0x58f   : > { %v1656_v36 = vadd.f32 %v2478_v44, %v1655_v35  ;;  %2882 = vmatprep.subr.bf16.mxu0 %v1688_v27  ;;  %v1679_v39 = vmax.f32 %v1653_v32, 0.0  ;;  %v3073_v44 = vld [vmem:[%s3508_s11 + $0x38] sm:$0xff]  }
 0x590   : > { %v1682_v38 = vmax.f32 %v1664_v34, 0.0  ;;  %2918 = vmatprep.subr.bf16.mxu1 %v3073_v44 }
 0x591   : > { %v1680_v40 = vmax.f32 %v1656_v36, 0.0  ;;  %2919 = vmatpush3.bf16.msra.mxu1 %v3073_v44 }
 0x592   : > { %v1690_v41 = vpack.c.bf16 %v1682_v38, %v1681_v37  ;;  %2883 = vmatpush3.bf16.msra.mxu0 %v1688_v27 }
 0x593   : > { %v1689_v42 = vpack.c.bf16 %v1680_v40, %v1679_v39 }
 0x595   : > { %2884 = vmatprep.subr.bf16.mxu0 %v1689_v42 }
 0x596   : > { %2885 = vmatpush3.bf16.msra.mxu0 %v1689_v42 }
 0x597   : > { %2886 = vmatprep.subr.bf16.mxu0 %v1690_v41 }
 0x59a   : > { %2887 = vmatpush3.bf16.msra.mxu0 %v1690_v41 }
 0x59b   : > { %2936 = vmatprep.subr.bf16.mxu0 %v3074_v45 }
 0x59d   : > { %2889 = vmatmul.mubr.bf16.vlgmr.msra.gmra.mrb[48].mxu0 %v3092_v43 }
 0x59e   : > { %2892 = vmatprep.mubr.bf16.mxu0 %v3093_v9  ;;  %2937 = vmatpush3.bf16.msra.mxu0 %v3074_v45 }
 0x5a5   : > { %2893 = vmatmul.mubr.bf16.gmra.mrb[52].mxu0 %v3257_v18  ;;  %v3075_v18 = vld [vmem:[%s3510_s13 + $0x8] sm:$0xff]  }
 0x5a6   : > { %2896 = vmatprep.mubr.bf16.mxu0 %v3260_v19  ;;  %2938 = vmatprep.subr.bf16.mxu0 %v3075_v18  ;;  %v3076_v19 = vld [vmem:[%s3510_s13 + $0x10] sm:$0xff]  }
 0x5a7   : > { %2939 = vmatpush3.bf16.msra.mxu0 %v3075_v18 }
 0x5a8   : > { %2940 = vmatprep.subr.bf16.mxu0 %v3076_v19 }
 0x5ab   : > { %2941 = vmatpush3.bf16.msra.mxu0 %v3076_v19 }
 0x5ad   : > { %2897 = vmatmul.mubr.bf16.gmra.mrb[56].mxu0 %v3265_v20  ;;  %v3077_v20 = vld [vmem:[%s3510_s13 + $0x18] sm:$0xff]  }
 0x5ae   : > { %2900 = vmatprep.mubr.bf16.mxu0 %v3268_v21  ;;  %2942 = vmatprep.subr.bf16.mxu0 %v3077_v20  ;;  %v3078_v21 = vld [vmem:[%s3510_s13 + $0x20] sm:$0xff]  }
 0x5af   : > { %2943 = vmatpush3.bf16.msra.mxu0 %v3077_v20 }
 0x5b0   : > { %2944 = vmatprep.subr.bf16.mxu0 %v3078_v21 }
 0x5b3   : > { %2945 = vmatpush3.bf16.msra.mxu0 %v3078_v21 }
 0x5b5   : > { %2901 = vmatmul.mubr.bf16.gmra.mrb[60].mxu0 %v3273_v22  ;;  %v3079_v22 = vld [vmem:[%s3510_s13 + $0x28] sm:$0xff]  }
 0x5b6   : > { %2946 = vmatprep.subr.bf16.mxu0 %v3079_v22 }
 0x5b7   : > { %2947 = vmatpush3.bf16.msra.mxu0 %v3079_v22 }
 0x5b8   : > { %2948 = vmatprep.subr.bf16.mxu0 %v3080_v4 }
 0x5bb   : > { %2949 = vmatpush3.bf16.msra.mxu0 %v3080_v4  ;;  %v3084_v4 = vld [vmem:[%s3512_s15 + $0x10] sm:$0xff]  }
 0x5bc   : > { %2950 = vmatprep.subr.bf16.mxu0 %v3081_v5 }
 0x5bf   : > { %2951 = vmatpush3.bf16.msra.mxu0 %v3081_v5  ;;  %v3085_v5 = vld [vmem:[%s3512_s15 + $0x18] sm:$0xff]  }
 0x670   : > { %v2890_v46 = vpop.f32.mrb[48].mxu0 }
 0x671   : > { %v1759_v47 = vpop.f32.mrb[49].mxu0 }
 0x672   : > { %v2891_v48 = vpop.f32.mrb[50].mxu0 }
 0x673   : > { %v1823_v49 = vpack.c.bf16 %v2891_v48, %v2890_v46  ;;  %v1762_v50 = vpop.f32.mrb[51].mxu0 }
 0x674   : > { %v1822_v51 = vpack.c.bf16 %v1762_v50, %v1759_v47 }
 0x676   : > { %2920 = vmatprep.mubr.bf16.mxu1 %v1822_v51 }
 0x677   : > { %2921 = vmatmul.mubr.bf16.vlgmr.msra.gmra.mrb[48].mxu1 %v1823_v49 }
 0x678   : > { %v2894_v52 = vpop.f32.mrb[52].mxu0 }
 0x679   : > { %v1775_v53 = vpop.f32.mrb[53].mxu0 }
 0x67a   : > { %v2895_v54 = vpop.f32.mrb[54].mxu0 }
 0x67b   : > { %v1825_v55 = vpack.c.bf16 %v2895_v54, %v2894_v52  ;;  %v1778_v57 = vpop.f32.mrb[55].mxu0 }
 0x67c   : > { %v1824_v58 = vpack.c.bf16 %v1778_v57, %v1775_v53 }
 0x67e   : > { %2924 = vmatprep.mubr.bf16.mxu1 %v1824_v58 }
 0x67f   : > { %2925 = vmatmul.mubr.bf16.gmra.mrb[52].mxu1 %v1825_v55 }
 0x680   : > { %v2898_v59 = vpop.f32.mrb[56].mxu0 }
 0x681   : > { %v1791_v56 = vpop.f32.mrb[57].mxu0 }
 0x682   : > { %v2899_v60 = vpop.f32.mrb[58].mxu0 }
 0x683   : > { %v1827_v61 = vpack.c.bf16 %v2899_v60, %v2898_v59  ;;  %v1794_v62 = vpop.f32.mrb[59].mxu0 }
 0x684   : > { %v1826_v63 = vpack.c.bf16 %v1794_v62, %v1791_v56 }
 0x686   : > { %2928 = vmatprep.mubr.bf16.mxu1 %v1826_v63 }
 0x687   : > { %2929 = vmatmul.mubr.bf16.gmra.mrb[56].mxu1 %v1827_v61 }
 0x688   : > { %v2902_v1 = vpop.f32.mrb[60].mxu0 }
 0x689   : > { %v1807_v0 = vpop.f32.mrb[61].mxu0 }
 0x68a   : > { %v2903_v16 = vpop.f32.mrb[62].mxu0 }
 0x68b   : > { %v1829_v17 = vpack.c.bf16 %v2903_v16, %v2902_v1  ;;  %v1810_v2 = vpop.f32.mrb[63].mxu0  ;;  %v3440_v16 = vld [vmem:[%s579_s19] sm:$0xff] }
 0x68c   : > { %v1828_v3 = vpack.c.bf16 %v1810_v2, %v1807_v0  ;;  %v3102_v0 = vmov 0.0   ;;  %v2182_v2 = vsel %vm2181_vm1, %v3440_v16, 0.0 }
 0x68d   : > { %2968 = vmatprep.subr.bf16.mxu1 %v3102_v0  ;;  %2988 = vmatprep.subr.bf16.mxu0 %v3102_v0 }
 0x68e   : > { %2932 = vmatprep.mubr.bf16.mxu1 %v1828_v3  ;;  %2183 = vadd.xlane.f32.xlu0 %v2182_v2  ;;  %v3083_v3 = vld [vmem:[%s3512_s15 + $0x8] sm:$0xff]  }
 0x68f   : > { %2933 = vmatmul.mubr.bf16.gmra.mrb[60].mxu1 %v1829_v17  ;;  %v3082_v17 = vld [vmem:[%s3512_s15] sm:$0xff]  }
 0x690   : > { %2984 = vmatprep.mubr.msk.bf16.mxu1 %vm3103_vm0, %v3102_v0 }
 0x74a   : > { %v2922_v7 = vpop.f32.mrb[48].mxu1 }
 0x74b   : > { %v1927_v8 = vadd.f32 %v2922_v7, %v2487_v6  ;;  %v1918_v10 = vpop.f32.mrb[49].mxu1  ;;  %v3087_v7 = vld [vmem:[%s3512_s15 + $0x28] sm:$0xff]  }
 0x74c   : > { %v1919_v11 = vadd.f32 %v2487_v6, %v1918_v10  ;;  %v2923_v12 = vpop.f32.mrb[50].mxu1  ;;  %v2496_v10 = vld [vmem:[%s3511_s14] ss:$0 sm:$0xff] }
 0x74d   : > { %v1930_v13 = vadd.f32 %v2923_v12, %v2487_v6  ;;  %v1921_v14 = vpop.f32.mrb[51].mxu1  ;;  %v1983_v23 = vmax.f32 %v1927_v8, 0.0  ;;  %v3088_v8 = vld [vmem:[%s3512_s15 + $0x30] sm:$0xff]  }
 0x74e   : > { %v1922_v15 = vadd.f32 %v2487_v6, %v1921_v14  ;;  %v1981_v25 = vmax.f32 %v1919_v11, 0.0 }
 0x74f   : > { %v1984_v24 = vmax.f32 %v1930_v13, 0.0 }
 0x750   : > { %v1982_v26 = vmax.f32 %v1922_v15, 0.0 }
 0x751   : > { %v1998_v27 = vpack.c.bf16 %v1984_v24, %v1983_v23 }
 0x752   : > { %v1997_v28 = vpack.c.bf16 %v1982_v26, %v1981_v25  ;;  %v2926_v29 = vpop.f32.mrb[52].mxu1 }
 0x753   : > { %v1943_v30 = vadd.f32 %v2926_v29, %v2487_v6  ;;  %v1934_v31 = vpop.f32.mrb[53].mxu1 }
 0x754   : > { %v1935_v32 = vadd.f32 %v2487_v6, %v1934_v31  ;;  %v2927_v33 = vpop.f32.mrb[54].mxu1  ;;  %2952 = vmatprep.mubr.bf16.mxu0 %v1997_v28 }
 0x755   : > { %v1946_v34 = vadd.f32 %v2927_v33, %v2487_v6  ;;  %v1937_v35 = vpop.f32.mrb[55].mxu1  ;;  %2953 = vmatmul.mubr.bf16.vlgmr.msra.gmra.mrb[64].mxu0 %v1998_v27  ;;  %v1987_v37 = vmax.f32 %v1943_v30, 0.0 }
 0x756   : > { %v1938_v36 = vadd.f32 %v2487_v6, %v1937_v35  ;;  %v1985_v39 = vmax.f32 %v1935_v32, 0.0  ;;  %2989 = vmatpush3.bf16.msra.mxu0 %v3082_v17 }
 0x757   : > { %v1988_v38 = vmax.f32 %v1946_v34, 0.0  ;;  %2990 = vmatprep.subr.bf16.mxu0 %v3102_v0 }
 0x758   : > { %v1986_v40 = vmax.f32 %v1938_v36, 0.0 }
 0x759   : > { %v2000_v41 = vpack.c.bf16 %v1988_v38, %v1987_v37 }
 0x75a   : > { %v1999_v42 = vpack.c.bf16 %v1986_v40, %v1985_v39  ;;  %v2930_v43 = vpop.f32.mrb[56].mxu1  ;;  %2991 = vmatpush3.bf16.msra.mxu0 %v3083_v3 }
 0x75b   : > { %v1959_v9 = vadd.f32 %v2930_v43, %v2487_v6  ;;  %v1950_v44 = vpop.f32.mrb[57].mxu1  ;;  %2992 = vmatprep.subr.bf16.mxu0 %v3102_v0 }
 0x75c   : > { %v1951_v45 = vadd.f32 %v2487_v6, %v1950_v44  ;;  %v2931_v18 = vpop.f32.mrb[58].mxu1  ;;  %2956 = vmatprep.mubr.bf16.mxu0 %v1999_v42 }
 0x75d   : > { %v1962_v19 = vadd.f32 %v2931_v18, %v2487_v6  ;;  %v1953_v20 = vpop.f32.mrb[59].mxu1  ;;  %2957 = vmatmul.mubr.bf16.gmra.mrb[68].mxu0 %v2000_v41  ;;  %v1991_v22 = vmax.f32 %v1959_v9, 0.0 }
 0x75e   : > { %v1954_v21 = vadd.f32 %v2487_v6, %v1953_v20  ;;  %v1989_v47 = vmax.f32 %v1951_v45, 0.0  ;;  %2993 = vmatpush3.bf16.msra.mxu0 %v3084_v4  ;;  %v2186_v4 = vpack.c.bf16 %v3440_v16, %v3440_v16 }
 0x75f   : > { %v1992_v46 = vmax.f32 %v1962_v19, 0.0  ;;  %2994 = vmatprep.subr.bf16.mxu0 %v3102_v0 }
 0x760   : > { %v1990_v48 = vmax.f32 %v1954_v21, 0.0 }
 0x761   : > { %v2002_v49 = vpack.c.bf16 %v1992_v46, %v1991_v22 }
 0x762   : > { %v2001_v50 = vpack.c.bf16 %v1990_v48, %v1989_v47  ;;  %v2934_v51 = vpop.f32.mrb[60].mxu1  ;;  %2995 = vmatpush3.bf16.msra.mxu0 %v3085_v5  ;;  %v3089_v5 = vld [vmem:[%s3512_s15 + $0x38] sm:$0xff]  }
 0x763   : > { %v1975_v52 = vadd.f32 %v2934_v51, %v2487_v6  ;;  %v1966_v53 = vpop.f32.mrb[61].mxu1  ;;  %2996 = vmatprep.subr.bf16.mxu0 %v3102_v0 }
 0x764   : > { %v1967_v54 = vadd.f32 %v2487_v6, %v1966_v53  ;;  %v2935_v55 = vpop.f32.mrb[62].mxu1  ;;  %2960 = vmatprep.mubr.bf16.mxu0 %v2001_v50 }
 0x765   : > { %v1978_v57 = vadd.f32 %v2935_v55, %v2487_v6  ;;  %v1969_v58 = vpop.f32.mrb[63].mxu1  ;;  %2961 = vmatmul.mubr.bf16.gmra.mrb[72].mxu0 %v2002_v49  ;;  %v1995_v56 = vmax.f32 %v1975_v52, 0.0 }
 0x766   : > { %v1970_v59 = vadd.f32 %v2487_v6, %v1969_v58  ;;  %v1993_v61 = vmax.f32 %v1967_v54, 0.0  ;;  %v3086_v6 = vld [vmem:[%s3512_s15 + $0x20] sm:$0xff]  }
 0x767   : > { %v1996_v60 = vmax.f32 %v1978_v57, 0.0  ;;  %2997 = vmatpush3.bf16.msra.mxu0 %v3086_v6  ;;  %v2184_v6 = vpop.xlane.xlu0 %2183 }
 0x768   : > { %v1994_v62 = vmax.f32 %v1970_v59, 0.0  ;;  %2998 = vmatprep.subr.bf16.mxu0 %v3102_v0 }
 0x769   : > { %v2004_v63 = vpack.c.bf16 %v1996_v60, %v1995_v56 }
 0x76a   : > { %v2003_v1 = vpack.c.bf16 %v1994_v62, %v1993_v61 }
 0x76b   : > { %2999 = vmatpush3.bf16.msra.mxu0 %v3087_v7  ;;  %v2185_v7 = vmax.f32 %v2184_v6, 1.0 }
 0x76c   : > { %2964 = vmatprep.mubr.bf16.mxu0 %v2003_v1  ;;  %3000 = vmatprep.subr.bf16.mxu0 %v3102_v0 }
 0x76d   : > { %2965 = vmatmul.mubr.bf16.gmra.mrb[76].mxu0 %v2004_v63  ;;  %3090 = vrcp.f32 %v2185_v7 }
 0x76e   : > { %3004 = vmatprep.mubr.msk.bf16.mxu0 %vm3103_vm0, %v3102_v0 }
 0x76f   : > { %3001 = vmatpush3.bf16.msra.mxu0 %v3088_v8  ;;  %v2229_v8 = vlaneseq }
 0x770   : > { %3002 = vmatprep.subr.bf16.mxu0 %v3102_v0 }
 0x773   : > { %3003 = vmatpush3.bf16.msra.mxu0 %v3089_v5 }
 0x828   : > { %v2954_v11 = vpop.f32.mrb[64].mxu0 }
 0x829   : > { %v2102_v12 = vadd.f32 %v2954_v11, %v2496_v10  ;;  %v2093_v13 = vpop.f32.mrb[65].mxu0 }
 0x82a   : > { %v2094_v14 = vadd.f32 %v2496_v10, %v2093_v13  ;;  %v2955_v15 = vpop.f32.mrb[66].mxu0 }
 0x82b   : > { %v2105_v23 = vadd.f32 %v2955_v15, %v2496_v10  ;;  %v2096_v24 = vpop.f32.mrb[67].mxu0  ;;  %v2158_v26 = vmax.f32 %v2102_v12, 0.0  ;;  %v3091_v12 = vpop.eup %3090 }
 0x82c   : > { %v2097_v25 = vadd.f32 %v2496_v10, %v2096_v24  ;;  %v2156_v28 = vmax.f32 %v2094_v14, 0.0 }
 0x82d   : > { %v2159_v27 = vmax.f32 %v2105_v23, 0.0 }
 0x82e   : > { %v2157_v29 = vmax.f32 %v2097_v25, 0.0  ;;  %v2505_v25 = vld [vmem:[%s3513_s16] ss:$0 sm:$0xff] }
 0x82f   : > { %v2173_v30 = vpack.c.bf16 %v2159_v27, %v2158_v26 }
 0x830   : > { %v2172_v31 = vpack.c.bf16 %v2157_v29, %v2156_v28  ;;  %v2958_v32 = vpop.f32.mrb[68].mxu0 }
 0x831   : > { %v2118_v33 = vadd.f32 %v2958_v32, %v2496_v10  ;;  %v2109_v34 = vpop.f32.mrb[69].mxu0 }
 0x832   : > { %v2110_v35 = vadd.f32 %v2496_v10, %v2109_v34  ;;  %v2959_v36 = vpop.f32.mrb[70].mxu0  ;;  %2969 = vmatpush3.bf16.msra.mxu1 %v2172_v31 }
 0x833   : > { %v2121_v37 = vadd.f32 %v2959_v36, %v2496_v10  ;;  %v2112_v38 = vpop.f32.mrb[71].mxu0  ;;  %2970 = vmatprep.subr.bf16.mxu1 %v3102_v0  ;;  %v2162_v40 = vmax.f32 %v2118_v33, 0.0 }
 0x834   : > { %v2113_v39 = vadd.f32 %v2496_v10, %v2112_v38  ;;  %v2160_v42 = vmax.f32 %v2110_v35, 0.0 }
 0x835   : > { %v2163_v41 = vmax.f32 %v2121_v37, 0.0 }
 0x836   : > { %v2161_v43 = vmax.f32 %v2113_v39, 0.0  ;;  %2971 = vmatpush3.bf16.msra.mxu1 %v2173_v30 }
 0x837   : > { %v2175_v9 = vpack.c.bf16 %v2163_v41, %v2162_v40  ;;  %2972 = vmatprep.subr.bf16.mxu1 %v3102_v0 }
 0x838   : > { %v2174_v44 = vpack.c.bf16 %v2161_v43, %v2160_v42  ;;  %v2962_v45 = vpop.f32.mrb[72].mxu0 }
 0x839   : > { %v2134_v18 = vadd.f32 %v2962_v45, %v2496_v10  ;;  %v2125_v19 = vpop.f32.mrb[73].mxu0 }
 0x83a   : > { %v2126_v20 = vadd.f32 %v2496_v10, %v2125_v19  ;;  %v2963_v21 = vpop.f32.mrb[74].mxu0  ;;  %2973 = vmatpush3.bf16.msra.mxu1 %v2174_v44 }
 0x83b   : > { %v2137_v22 = vadd.f32 %v2963_v21, %v2496_v10  ;;  %v2128_v46 = vpop.f32.mrb[75].mxu0  ;;  %2974 = vmatprep.subr.bf16.mxu1 %v3102_v0  ;;  %v2166_v48 = vmax.f32 %v2134_v18, 0.0 }
 0x83c   : > { %v2129_v47 = vadd.f32 %v2496_v10, %v2128_v46  ;;  %v2164_v50 = vmax.f32 %v2126_v20, 0.0 }
 0x83d   : > { %v2167_v49 = vmax.f32 %v2137_v22, 0.0 }
 0x83e   : > { %v2165_v51 = vmax.f32 %v2129_v47, 0.0  ;;  %2975 = vmatpush3.bf16.msra.mxu1 %v2175_v9 }
 0x83f   : > { %v2177_v52 = vpack.c.bf16 %v2167_v49, %v2166_v48  ;;  %2976 = vmatprep.subr.bf16.mxu1 %v3102_v0 }
 0x840   : > { %v2176_v53 = vpack.c.bf16 %v2165_v51, %v2164_v50  ;;  %v2966_v54 = vpop.f32.mrb[76].mxu0 }
 0x841   : > { %v2150_v55 = vadd.f32 %v2966_v54, %v2496_v10  ;;  %v2141_v57 = vpop.f32.mrb[77].mxu0 }
 0x842   : > { %v2142_v58 = vadd.f32 %v2496_v10, %v2141_v57  ;;  %v2967_v59 = vpop.f32.mrb[78].mxu0  ;;  %2977 = vmatpush3.bf16.msra.mxu1 %v2176_v53 }
 0x843   : > { %v2153_v56 = vadd.f32 %v2967_v59, %v2496_v10  ;;  %v2144_v60 = vpop.f32.mrb[79].mxu0  ;;  %2978 = vmatprep.subr.bf16.mxu1 %v3102_v0  ;;  %v2170_v62 = vmax.f32 %v2150_v55, 0.0 }
 0x844   : > { %v2145_v61 = vadd.f32 %v2496_v10, %v2144_v60  ;;  %v2168_v1 = vmax.f32 %v2142_v58, 0.0  ;;  %v2230_v10 = vshrl.u32 %v2229_v8, 7 }
 0x845   : > { %v2171_v63 = vmax.f32 %v2153_v56, 0.0 }
 0x846   : > { %v2169_v17 = vmax.f32 %v2145_v61, 0.0  ;;  %2979 = vmatpush3.bf16.msra.mxu1 %v2177_v52  ;;  %v2231_v11 = vsub.s32 0, %v2230_v10 }
 0x847   : > { %v2179_v2 = vpack.c.bf16 %v2171_v63, %v2170_v62  ;;  %2980 = vmatprep.subr.bf16.mxu1 %v3102_v0 }
 0x848   : > { %v2178_v3 = vpack.c.bf16 %v2169_v17, %v2168_v1  ;;  %v2232_v13 = vrot.slane %v3091_v12, %v2231_v11 }
 0x84a   : > { %2981 = vmatpush3.bf16.msra.mxu1 %v2178_v3 }
 0x84b   : > { %2982 = vmatprep.subr.bf16.mxu1 %v3102_v0 }
 0x84e   : > { %2983 = vmatpush3.bf16.msra.mxu1 %v2179_v2 }
 0x851   : > { %2985 = vmatmul.mubr.bf16.vlgmr.msra.gmra.mrb[64].mxu1 %v2186_v4 }
 0x924   : > { %v2221_v0 = vpop.f32.mrb[64].mxu1 }
 0x925   : > { %v2233_v14 = vmul.f32 %v2232_v13, %v2221_v0  ;;  %v2986_v15 = vpop.f32.mrb[65].mxu1 }
 0x926   : > { %v2224_v16 = vpop.f32.mrb[66].mxu1 }
 0x927   : > { %v2234_v23 = vpack.c.bf16 %v2233_v14, %v2233_v14  ;;  %v2987_v24 = vpop.f32.mrb[67].mxu1 }
 0x929   : > { %3005 = vmatmul.mubr.bf16.vlgmr.msra.gmra.mrb[80].mxu0 %v2234_v23 }
 0x9fc   : > { %v2340_v26 = vpop.f32.mrb[80].mxu0 }
 0x9fd   : > { %v2341_v27 = vadd.f32 %v2505_v25, %v2340_v26  ;;  %v3006_v28 = vpop.f32.mrb[81].mxu0 }
 0x9fe   : > { %v2343_v29 = vpop.f32.mrb[82].mxu0 }
 0x9ff   : > { %2346 = vst [vmem:[%s583_s0] sm:$0xff] %v2341_v27  ;;  %v3007_v30 = vpop.f32.mrb[83].mxu0 }
 0xa00 PF: > { %s27_s24 = sadd.s32 1, %s3100_s24  }
 0xa01   : > { %p24_p4 = scmp.ge.s32.totalorder %s27_s24, 4  }
 0xa03   :  { %26 = sbr.rel (!%p24_p4) target bundleno = 3 (0x3), region = 124 }

</bundles_post_ra>
